<compile_context>
chip_gen: v7x
topology: tpu7x:2x2x1
jax: 0.10.0
libtpu: 0.0.40
codegen_flags: <defaults>
</compile_context>

<pallas_src>
import functools

import jax
import jax.numpy as jnp
import numpy as np
from jax.experimental import pallas as pl
from jax.experimental.pallas import tpu as pltpu


# Guard rows kept at zero above/below each image inside the VMEM scratch buffer.
# Must be >= the largest kh offset (dilation 3); 16 keeps the interior bf16 stores
# aligned to full (16, 128) bf16 tiles.
_GUARD = 16


def _fused_chain_kernel(x_ref, w1_ref, w3_ref, shift_ref, o_ref, buf_ref,
                        *, NB, H, WC, layer_meta):
    """Runs the whole 12-layer conv+BN+ReLU chain for NB batch images.

    x_ref:     (NB, H, WC)               lane-dense bf16 input activations
    w1_ref:    (n1, WC, WC)     bf16     banded weights of the 1x1 layers (scale folded)
    w3_ref:    (n3, 3*WC, WC)   bf16     tap-stacked banded weights of the 3x3 layers
    shift_ref: (L, WC)          f32      folded conv-bias + BN shift
    o_ref:     (NB, H, WC)      f32      lane-dense output activations
    buf_ref:   (NB*(H+2G), WC)  bf16     VMEM scratch; per-image zero guard bands give
                                         free zero-padding along H for the kh offsets.
    layer_meta: tuple of ("1x1"|"3x3", weight_index, kh_offsets) per layer (static).
    """
    G = _GUARD
    stride = H + 2 * G
    zeros_g = jnp.zeros((G, WC), jnp.bfloat16)

    # Zero only the guard bands (the interior rows are always overwritten before use).
    # Done every grid step: each TensorCore has its own scratch under "parallel".
    for i in range(NB):
        base = i * stride
        buf_ref[pl.ds(base, G), :] = zeros_g
        buf_ref[pl.ds(base + G + H, G), :] = zeros_g

    def store_interior(act_bf16):
        for i in range(NB):
            rows = act_bf16[i * H:(i + 1) * H] if NB > 1 else act_bf16
            buf_ref[pl.ds(i * stride + G, H), :] = rows

    # Live activation (bf16 for MXU feeds, f32 only transiently after each dot).
    act_bf16 = x_ref[...].reshape(NB * H, WC)

    if layer_meta[0][0] == "3x3":          # not hit for this module; kept for generality
        store_interior(act_bf16)

    n_layers = len(layer_meta)
    act_f32 = None
    for l, (kind, widx, offs) in enumerate(layer_meta):     # static 12-layer loop
        if kind == "1x1":
            lhs = act_bf16                                   # straight from vregs
            rhs = w1_ref[widx]                               # (WC, WC)
        else:
            slabs = []
            for dh in offs:                                  # kh row offsets (-d, 0, d)
                parts = [buf_ref[pl.ds(i * stride + G + dh, H), :] for i in range(NB)]
                slabs.append(parts[0] if NB == 1 else jnp.concatenate(parts, axis=0))
            lhs = jnp.concatenate(slabs, axis=1)             # (NB*H, 3*WC) lane concat
            rhs = w3_ref[widx]                               # (3*WC, WC)
        acc = jnp.dot(lhs, rhs, preferred_element_type=jnp.float32)
        shift = shift_ref[pl.ds(l, 1), :]                    # (1, WC)
        act_f32 = jnp.maximum(acc + shift, 0.0)              # fused bias/BN shift + ReLU
        act_bf16 = act_f32.astype(jnp.bfloat16)
        # Only round-trip through VMEM if the NEXT layer needs shifted (3x3) taps.
        if l + 1 < n_layers and layer_meta[l + 1][0] == "3x3":
            store_interior(act_bf16)

    o_ref[...] = act_f32.reshape(NB, H, WC).astype(o_ref.dtype)


def _banded_taps(w_hwio, W, C, dil):
    """Per-kh banded (W*C, W*C) matrices absorbing kw offsets, channel mixing and the
    zero padding along W, plus the corresponding kh row offsets."""
    KH, KW, Cin, Cout = w_hwio.shape
    ch, cw = (KH - 1) // 2, (KW - 1) // 2
    w = np.asarray(w_hwio, np.float32)
    mats, offs = [], []
    for kh in range(KH):
        M = np.zeros((W * C, W * C), np.float32)
        for kw in range(KW):
            dw = (kw - cw) * dil
            for wo in range(W):
                wi = wo + dw
                if 0 <= wi < W:
                    M[wi * C:wi * C + Cin, wo * C:wo * C + Cout] = w[kh, kw]
        mats.append(M)
        offs.append((kh - ch) * dil)
    return mats, offs


def init_layers(key, inplanes, planes):
    """Deterministic synthetic init matching the module's parameter shapes.

    Returns per-layer dicts with HWIO weights and the folded eval-mode BN affine,
    consumed both by the kernel packer and by the pure-JAX reference."""
    specs = []
    cin = inplanes
    for _ in range(4):
        specs.append((cin, planes, 1, 1))       # 1x1 conv, no pad
        specs.append((planes, planes, 3, 1))    # 3x3 conv, dilation 1, pad 1
        specs.append((planes, planes, 3, 3))    # 3x3 conv, dilation 3, pad 3
        cin = planes

    eps = 1e-5
    layers = []
    for (ci, co, k, dil) in specs:
        key, wk = jax.random.split(key)
        # OIHW (PyTorch) -> HWIO; small scale keeps activations tame over 12 layers.
        w_oihw = 0.2 * jax.random.normal(wk, (co, ci, k, k), jnp.float32)
        w_hwio = jnp.transpose(w_oihw, (2, 3, 1, 0))
        bias = jnp.zeros((co,), jnp.float32)        # nn.Parameter(torch.zeros)
        gamma = jnp.ones((co,), jnp.float32)        # BN defaults (eval-mode folding)
        beta = jnp.zeros((co,), jnp.float32)
        mean = jnp.zeros((co,), jnp.float32)
        var = jnp.ones((co,), jnp.float32)
        s = gamma / jnp.sqrt(var + eps)             # fold BN ...
        layers.append(dict(w=w_hwio,
                           scale_c=s,
                           shift_c=beta - mean * s + bias * s,   # ... and conv bias
                           k=k, dil=dil, pad=((k - 1) // 2) * dil))
    return layers


def pack_for_kernel(layers, W, inplanes, planes):
    """Precompute lane-dense banded bf16 weights / f32 shifts for the fused kernel."""
    C = max(inplanes, planes)          # common channel width per lane block
    WC = W * C
    w1_list, w3_list, shifts, layer_meta = [], [], [], []
    for p in layers:
        mats, offs = _banded_taps(p["w"], W, C, p["dil"])
        cout = p["w"].shape[-1]
        sc = np.zeros((WC,), np.float32)
        sh = np.zeros((WC,), np.float32)
        for wo in range(W):
            sc[wo * C:wo * C + cout] = np.asarray(p["scale_c"], np.float32)
            sh[wo * C:wo * C + cout] = np.asarray(p["shift_c"], np.float32)
        # Fold BN scale into the banded-weight output columns -> epilogue is add+ReLU.
        mats = [m * sc[None, :] for m in mats]
        shifts.append(sh)
        if len(offs) == 1:                              # 1x1 layer
            layer_meta.append(("1x1", len(w1_list), tuple(offs)))
            w1_list.append(mats[0])
        else:                                           # 3x3 layer: stack taps along K
            layer_meta.append(("3x3", len(w3_list), tuple(offs)))
            w3_list.append(np.concatenate(mats, axis=0))
        assert max(abs(o) for o in offs) <= _GUARD
    return dict(w1=jnp.asarray(np.stack(w1_list), jnp.bfloat16),   # (n1, WC, WC)
                w3=jnp.asarray(np.stack(w3_list), jnp.bfloat16),   # (n3, 3*WC, WC)
                shift=jnp.asarray(np.stack(shifts), jnp.float32),  # (L, WC)
                layer_meta=tuple(layer_meta),
                C=C, planes=planes)


def _auto_images_per_step(N):
    """v7x (2 TensorCores): 1 image per grid step so the batch shards across cores.
    Single-TC v5e/v6e (and unknown targets): stack the whole batch into one step."""
    try:
        kind = jax.devices()[0].device_kind.lower()
    except Exception:
        kind = ""
    n_tc = 2 if "v7" in kind else 1
    if n_tc > 1 and N % n_tc == 0:
        return max(1, N // n_tc)
    return N


def branch_for_middle_forward(x_nhwc, packed, images_per_step=None):
    """Fused forward pass: one pallas_call for the whole 12-layer chain."""
    N, H, W, cin = x_nhwc.shape
    C, planes = packed["C"], packed["planes"]
    WC = W * C
    NB = images_per_step if images_per_step is not None else _auto_images_per_step(N)
    assert N % NB == 0
    n_steps = N // NB

    # Lane-dense layout: pad channels to C, fold (W, C) into one 128-wide lane axis,
    # and feed the MXU-native bf16 (default precision uses bf16 passes anyway).
    x_lane = jnp.pad(x_nhwc, ((0, 0), (0, 0), (0, 0), (0, C - cin))) \
                .reshape(N, H, WC).astype(jnp.bfloat16)

    kernel = functools.partial(_fused_chain_kernel, NB=NB, H=H, WC=WC,
                               layer_meta=packed["layer_meta"])
    stride = H + 2 * _GUARD
    # NOTE: at real SSD feature-map sizes, add pipeline_mode=pl.Buffered(1) on the
    # constant-index weight BlockSpecs to avoid double-buffering them against VMEM.
    out_lane = pl.pallas_call(
        kernel,
        out_shape=jax.ShapeDtypeStruct((N, H, WC), jnp.float32),
        grid=(n_steps,),
        in_specs=[
            pl.BlockSpec((NB, H, WC), lambda n: (n, 0, 0)),
            pl.BlockSpec(packed["w1"].shape, lambda n: (0, 0, 0)),
            pl.BlockSpec(packed["w3"].shape, lambda n: (0, 0, 0)),
            pl.BlockSpec(packed["shift"].shape, lambda n: (0, 0)),
        ],
        out_specs=pl.BlockSpec((NB, H, WC), lambda n: (n, 0, 0)),
        scratch_shapes=[pltpu.VMEM((NB * stride, WC), jnp.bfloat16)],
        compiler_params=pltpu.CompilerParams(
            dimension_semantics=("parallel",)),   # batch shards across v7x TensorCores
    )(x_lane, packed["w1"], packed["w3"], packed["shift"])

    return out_lane.reshape(N, H, W, C)[..., :planes]


def _reference_forward(x_nhwc, layers):
    """Pure-JAX reference (lax conv chain, HIGHEST precision) for correctness checking."""
    out = x_nhwc
    for p in layers:
        dn = jax.lax.conv_dimension_numbers(out.shape, p["w"].shape,
                                            ("NHWC", "HWIO", "NHWC"))
        out = jax.lax.conv_general_dilated(
            out, p["w"], window_strides=(1, 1),
            padding=[(p["pad"], p["pad"])] * 2,
            rhs_dilation=(p["dil"], p["dil"]),
            dimension_numbers=dn,
            precision=jax.lax.Precision.HIGHEST)
        out = out * p["scale_c"] + p["shift_c"]
        out = jnp.maximum(out, 0.0)
    return out


if __name__ == "__main__":
    N, inplanes, planes, H, W = 2, 4, 8, 16, 16

    key = jax.random.PRNGKey(0)
    key, xk = jax.random.split(key)
    # Input built in PyTorch's NCHW convention, then moved to the kernel's NHWC layout.
    x_nchw = jax.random.normal(xk, (N, inplanes, H, W), jnp.float32)
    x_nhwc = jnp.transpose(x_nchw, (0, 2, 3, 1))

    layers = init_layers(key, inplanes, planes)
    packed = pack_for_kernel(layers, W=W, inplanes=inplanes, planes=planes)

    out = jax.block_until_ready(branch_for_middle_forward(x_nhwc, packed))

    ref = jax.block_until_ready(_reference_forward(x_nhwc, layers))
    # Kernel uses bf16 weights/activation-scratch with f32 MXU accumulation (equivalent to
    # the default-precision bf16 passes), the reference runs at HIGHEST; tolerance covers
    # bf16 rounding compounded over 12 layers.
    np.testing.assert_allclose(np.asarray(out), np.asarray(ref),
                               rtol=6e-2, atol=3e-2)

    assert out.shape == (N, H, W, planes)
    print("KERNEL_OK")
</pallas_src>

<mosaic_0001>
module attributes {stable_mosaic.version = 11 : i64} {
  func.func @_fused_chain_kernel(%arg0: i32, %arg1: memref<2x16x128xbf16, #tpu.memory_space<vmem>>, %arg2: memref<4x128x128xbf16, #tpu.memory_space<vmem>>, %arg3: memref<8x384x128xbf16, #tpu.memory_space<vmem>>, %arg4: memref<12x128xf32, #tpu.memory_space<vmem>>, %arg5: memref<2x16x128xf32, #tpu.memory_space<vmem>>, %arg6: memref<96x128xbf16, #tpu.memory_space<vmem>>) attributes {dimension_semantics = [#tpu.dimension_semantics<parallel>], iteration_bounds = array<i64: 1>, scalar_prefetch = 0 : i64, scratch_operands = 1 : i64, tpu.core_type = #tpu.core_type<tc>, window_params = [{transform_indices = @transform_0, window_bounds = array<i64: 2, 16, 128>}, {pipeline_mode = #tpu.pipeline_mode<synchronous>, transform_indices = @transform_1, window_bounds = array<i64: 4, 128, 128>}, {pipeline_mode = #tpu.pipeline_mode<synchronous>, transform_indices = @transform_2, window_bounds = array<i64: 8, 384, 128>}, {pipeline_mode = #tpu.pipeline_mode<synchronous>, transform_indices = @transform_3, window_bounds = array<i64: 12, 128>}, {transform_indices = @transform_4, window_bounds = array<i64: 2, 16, 128>}]} {
    %cst = arith.constant 0.000000e+00 : bf16
    %0 = vector.broadcast %cst : bf16 to vector<16x128xbf16>
    %c0 = arith.constant 0 : index
    %c0_0 = arith.constant 0 : index
    %1 = vector.load %arg6[%c0, %c0_0] : memref<96x128xbf16, #tpu.memory_space<vmem>>, vector<16x128xbf16>
    tpu.vector_store %arg6[%c0, %c0_0], %0 {strides = array<i32>} : memref<96x128xbf16, #tpu.memory_space<vmem>>, vector<16x128xbf16>,
    %c32 = arith.constant 32 : index
    %c0_1 = arith.constant 0 : index
    %2 = vector.load %arg6[%c32, %c0_1] : memref<96x128xbf16, #tpu.memory_space<vmem>>, vector<16x128xbf16>
    tpu.vector_store %arg6[%c32, %c0_1], %0 {strides = array<i32>} : memref<96x128xbf16, #tpu.memory_space<vmem>>, vector<16x128xbf16>,
    %c48 = arith.constant 48 : index
    %c0_2 = arith.constant 0 : index
    %3 = vector.load %arg6[%c48, %c0_2] : memref<96x128xbf16, #tpu.memory_space<vmem>>, vector<16x128xbf16>
    tpu.vector_store %arg6[%c48, %c0_2], %0 {strides = array<i32>} : memref<96x128xbf16, #tpu.memory_space<vmem>>, vector<16x128xbf16>,
    %c80 = arith.constant 80 : index
    %c0_3 = arith.constant 0 : index
    %4 = vector.load %arg6[%c80, %c0_3] : memref<96x128xbf16, #tpu.memory_space<vmem>>, vector<16x128xbf16>
    tpu.vector_store %arg6[%c80, %c0_3], %0 {strides = array<i32>} : memref<96x128xbf16, #tpu.memory_space<vmem>>, vector<16x128xbf16>,
    %c0_4 = arith.constant 0 : index
    %c0_5 = arith.constant 0 : index
    %c0_6 = arith.constant 0 : index
    %5 = vector.load %arg1[%c0_4, %c0_5, %c0_6] : memref<2x16x128xbf16, #tpu.memory_space<vmem>>, vector<2x16x128xbf16>
    %6 = vector.shape_cast %5 : vector<2x16x128xbf16> to vector<32x128xbf16>
    %c0_7 = arith.constant 0 : index
    %c0_8 = arith.constant 0 : index
    %c0_9 = arith.constant 0 : index
    %7 = vector.load %arg2[%c0_7, %c0_8, %c0_9] : memref<4x128x128xbf16, #tpu.memory_space<vmem>>, vector<1x128x128xbf16>
    %8 = vector.shape_cast %7 : vector<1x128x128xbf16> to vector<128x128xbf16>
    %cst_10 = arith.constant dense<0.000000e+00> : vector<32x128xf32>
    %9 = tpu.matmul %6, %8, %cst_10 {dimension_numbers = #tpu.dot_dimension_numbers<[1], [0], [0], [1], [0, 0, 1, 1], [], []>} : vector<32x128xbf16>, vector<128x128xbf16>, vector<32x128xf32> -> vector<32x128xf32>
    %c0_11 = arith.constant 0 : index
    %c0_12 = arith.constant 0 : index
    %10 = vector.load %arg4[%c0_11, %c0_12] : memref<12x128xf32, #tpu.memory_space<vmem>>, vector<1x128xf32>
    %11 = vector.broadcast %10 : vector<1x128xf32> to vector<32x128xf32>
    %12 = arith.addf %9, %11 : vector<32x128xf32>
    %cst_13 = arith.constant 0.000000e+00 : f32
    %13 = vector.broadcast %cst_13 : f32 to vector<32x128xf32>
    %14 = arith.maximumf %12, %13 : vector<32x128xf32>
    %15 = arith.truncf %14 : vector<32x128xf32> to vector<32x128xbf16>
    %16 = vector.extract_strided_slice %15 {offsets = [0, 0], sizes = [16, 128], strides = [1, 1]} : vector<32x128xbf16> to vector<16x128xbf16>
    %c16 = arith.constant 16 : index
    %c0_14 = arith.constant 0 : index
    %17 = vector.load %arg6[%c16, %c0_14] : memref<96x128xbf16, #tpu.memory_space<vmem>>, vector<16x128xbf16>
    tpu.vector_store %arg6[%c16, %c0_14], %16 {strides = array<i32>} : memref<96x128xbf16, #tpu.memory_space<vmem>>, vector<16x128xbf16>,
    %18 = vector.extract_strided_slice %15 {offsets = [16, 0], sizes = [16, 128], strides = [1, 1]} : vector<32x128xbf16> to vector<16x128xbf16>
    %c64 = arith.constant 64 : index
    %c0_15 = arith.constant 0 : index
    %19 = vector.load %arg6[%c64, %c0_15] : memref<96x128xbf16, #tpu.memory_space<vmem>>, vector<16x128xbf16>
    tpu.vector_store %arg6[%c64, %c0_15], %18 {strides = array<i32>} : memref<96x128xbf16, #tpu.memory_space<vmem>>, vector<16x128xbf16>,
    %c15 = arith.constant 15 : index
    %c0_16 = arith.constant 0 : index
    %20 = vector.load %arg6[%c15, %c0_16] : memref<96x128xbf16, #tpu.memory_space<vmem>>, vector<16x128xbf16>
    %c63 = arith.constant 63 : index
    %c0_17 = arith.constant 0 : index
    %21 = vector.load %arg6[%c63, %c0_17] : memref<96x128xbf16, #tpu.memory_space<vmem>>, vector<16x128xbf16>
    %22 = tpu.concatenate %20, %21 in 0 : vector<16x128xbf16>, vector<16x128xbf16> -> vector<32x128xbf16>
    %c16_18 = arith.constant 16 : index
    %c0_19 = arith.constant 0 : index
    %23 = vector.load %arg6[%c16_18, %c0_19] : memref<96x128xbf16, #tpu.memory_space<vmem>>, vector<16x128xbf16>
    %c64_20 = arith.constant 64 : index
    %c0_21 = arith.constant 0 : index
    %24 = vector.load %arg6[%c64_20, %c0_21] : memref<96x128xbf16, #tpu.memory_space<vmem>>, vector<16x128xbf16>
    %25 = tpu.concatenate %23, %24 in 0 : vector<16x128xbf16>, vector<16x128xbf16> -> vector<32x128xbf16>
    %c17 = arith.constant 17 : index
    %c0_22 = arith.constant 0 : index
    %26 = vector.load %arg6[%c17, %c0_22] : memref<96x128xbf16, #tpu.memory_space<vmem>>, vector<16x128xbf16>
    %c65 = arith.constant 65 : index
    %c0_23 = arith.constant 0 : index
    %27 = vector.load %arg6[%c65, %c0_23] : memref<96x128xbf16, #tpu.memory_space<vmem>>, vector<16x128xbf16>
    %28 = tpu.concatenate %26, %27 in 0 : vector<16x128xbf16>, vector<16x128xbf16> -> vector<32x128xbf16>
    %29 = tpu.concatenate %22, %25, %28 in 1 : vector<32x128xbf16>, vector<32x128xbf16>, vector<32x128xbf16> -> vector<32x384xbf16>
    %c0_24 = arith.constant 0 : index
    %c0_25 = arith.constant 0 : index
    %c0_26 = arith.constant 0 : index
    %30 = vector.load %arg3[%c0_24, %c0_25, %c0_26] : memref<8x384x128xbf16, #tpu.memory_space<vmem>>, vector<1x384x128xbf16>
    %31 = vector.shape_cast %30 : vector<1x384x128xbf16> to vector<384x128xbf16>
    %cst_27 = arith.constant dense<0.000000e+00> : vector<32x128xf32>
    %32 = tpu.matmul %29, %31, %cst_27 {dimension_numbers = #tpu.dot_dimension_numbers<[1], [0], [0], [1], [0, 0, 1, 1], [], []>} : vector<32x384xbf16>, vector<384x128xbf16>, vector<32x128xf32> -> vector<32x128xf32>
    %c1 = arith.constant 1 : index
    %c0_28 = arith.constant 0 : index
    %33 = vector.load %arg4[%c1, %c0_28] : memref<12x128xf32, #tpu.memory_space<vmem>>, vector<1x128xf32>
    %34 = vector.broadcast %33 : vector<1x128xf32> to vector<32x128xf32>
    %35 = arith.addf %32, %34 : vector<32x128xf32>
    %cst_29 = arith.constant 0.000000e+00 : f32
    %36 = vector.broadcast %cst_29 : f32 to vector<32x128xf32>
    %37 = arith.maximumf %35, %36 : vector<32x128xf32>
    %38 = arith.truncf %37 : vector<32x128xf32> to vector<32x128xbf16>
    %39 = vector.extract_strided_slice %38 {offsets = [0, 0], sizes = [16, 128], strides = [1, 1]} : vector<32x128xbf16> to vector<16x128xbf16>
    %c16_30 = arith.constant 16 : index
    %c0_31 = arith.constant 0 : index
    %40 = vector.load %arg6[%c16_30, %c0_31] : memref<96x128xbf16, #tpu.memory_space<vmem>>, vector<16x128xbf16>
    tpu.vector_store %arg6[%c16_30, %c0_31], %39 {strides = array<i32>} : memref<96x128xbf16, #tpu.memory_space<vmem>>, vector<16x128xbf16>,
    %41 = vector.extract_strided_slice %38 {offsets = [16, 0], sizes = [16, 128], strides = [1, 1]} : vector<32x128xbf16> to vector<16x128xbf16>
    %c64_32 = arith.constant 64 : index
    %c0_33 = arith.constant 0 : index
    %42 = vector.load %arg6[%c64_32, %c0_33] : memref<96x128xbf16, #tpu.memory_space<vmem>>, vector<16x128xbf16>
    tpu.vector_store %arg6[%c64_32, %c0_33], %41 {strides = array<i32>} : memref<96x128xbf16, #tpu.memory_space<vmem>>, vector<16x128xbf16>,
    %c13 = arith.constant 13 : index
    %c0_34 = arith.constant 0 : index
    %43 = vector.load %arg6[%c13, %c0_34] : memref<96x128xbf16, #tpu.memory_space<vmem>>, vector<16x128xbf16>
    %c61 = arith.constant 61 : index
    %c0_35 = arith.constant 0 : index
    %44 = vector.load %arg6[%c61, %c0_35] : memref<96x128xbf16, #tpu.memory_space<vmem>>, vector<16x128xbf16>
    %45 = tpu.concatenate %43, %44 in 0 : vector<16x128xbf16>, vector<16x128xbf16> -> vector<32x128xbf16>
    %c16_36 = arith.constant 16 : index
    %c0_37 = arith.constant 0 : index
    %46 = vector.load %arg6[%c16_36, %c0_37] : memref<96x128xbf16, #tpu.memory_space<vmem>>, vector<16x128xbf16>
    %c64_38 = arith.constant 64 : index
    %c0_39 = arith.constant 0 : index
    %47 = vector.load %arg6[%c64_38, %c0_39] : memref<96x128xbf16, #tpu.memory_space<vmem>>, vector<16x128xbf16>
    %48 = tpu.concatenate %46, %47 in 0 : vector<16x128xbf16>, vector<16x128xbf16> -> vector<32x128xbf16>
    %c19 = arith.constant 19 : index
    %c0_40 = arith.constant 0 : index
    %49 = vector.load %arg6[%c19, %c0_40] : memref<96x128xbf16, #tpu.memory_space<vmem>>, vector<16x128xbf16>
    %c67 = arith.constant 67 : index
    %c0_41 = arith.constant 0 : index
    %50 = vector.load %arg6[%c67, %c0_41] : memref<96x128xbf16, #tpu.memory_space<vmem>>, vector<16x128xbf16>
    %51 = tpu.concatenate %49, %50 in 0 : vector<16x128xbf16>, vector<16x128xbf16> -> vector<32x128xbf16>
    %52 = tpu.concatenate %45, %48, %51 in 1 : vector<32x128xbf16>, vector<32x128xbf16>, vector<32x128xbf16> -> vector<32x384xbf16>
    %c1_42 = arith.constant 1 : index
    %c0_43 = arith.constant 0 : index
    %c0_44 = arith.constant 0 : index
    %53 = vector.load %arg3[%c1_42, %c0_43, %c0_44] : memref<8x384x128xbf16, #tpu.memory_space<vmem>>, vector<1x384x128xbf16>
    %54 = vector.shape_cast %53 : vector<1x384x128xbf16> to vector<384x128xbf16>
    %cst_45 = arith.constant dense<0.000000e+00> : vector<32x128xf32>
    %55 = tpu.matmul %52, %54, %cst_45 {dimension_numbers = #tpu.dot_dimension_numbers<[1], [0], [0], [1], [0, 0, 1, 1], [], []>} : vector<32x384xbf16>, vector<384x128xbf16>, vector<32x128xf32> -> vector<32x128xf32>
    %c2 = arith.constant 2 : index
    %c0_46 = arith.constant 0 : index
    %56 = vector.load %arg4[%c2, %c0_46] : memref<12x128xf32, #tpu.memory_space<vmem>>, vector<1x128xf32>
    %57 = vector.broadcast %56 : vector<1x128xf32> to vector<32x128xf32>
    %58 = arith.addf %55, %57 : vector<32x128xf32>
    %cst_47 = arith.constant 0.000000e+00 : f32
    %59 = vector.broadcast %cst_47 : f32 to vector<32x128xf32>
    %60 = arith.maximumf %58, %59 : vector<32x128xf32>
    %61 = arith.truncf %60 : vector<32x128xf32> to vector<32x128xbf16>
    %c1_48 = arith.constant 1 : index
    %c0_49 = arith.constant 0 : index
    %c0_50 = arith.constant 0 : index
    %62 = vector.load %arg2[%c1_48, %c0_49, %c0_50] : memref<4x128x128xbf16, #tpu.memory_space<vmem>>, vector<1x128x128xbf16>
    %63 = vector.shape_cast %62 : vector<1x128x128xbf16> to vector<128x128xbf16>
    %cst_51 = arith.constant dense<0.000000e+00> : vector<32x128xf32>
    %64 = tpu.matmul %61, %63, %cst_51 {dimension_numbers = #tpu.dot_dimension_numbers<[1], [0], [0], [1], [0, 0, 1, 1], [], []>} : vector<32x128xbf16>, vector<128x128xbf16>, vector<32x128xf32> -> vector<32x128xf32>
    %c3 = arith.constant 3 : index
    %c0_52 = arith.constant 0 : index
    %65 = vector.load %arg4[%c3, %c0_52] : memref<12x128xf32, #tpu.memory_space<vmem>>, vector<1x128xf32>
    %66 = vector.broadcast %65 : vector<1x128xf32> to vector<32x128xf32>
    %67 = arith.addf %64, %66 : vector<32x128xf32>
    %cst_53 = arith.constant 0.000000e+00 : f32
    %68 = vector.broadcast %cst_53 : f32 to vector<32x128xf32>
    %69 = arith.maximumf %67, %68 : vector<32x128xf32>
    %70 = arith.truncf %69 : vector<32x128xf32> to vector<32x128xbf16>
    %71 = vector.extract_strided_slice %70 {offsets = [0, 0], sizes = [16, 128], strides = [1, 1]} : vector<32x128xbf16> to vector<16x128xbf16>
    %c16_54 = arith.constant 16 : index
    %c0_55 = arith.constant 0 : index
    %72 = vector.load %arg6[%c16_54, %c0_55] : memref<96x128xbf16, #tpu.memory_space<vmem>>, vector<16x128xbf16>
    tpu.vector_store %arg6[%c16_54, %c0_55], %71 {strides = array<i32>} : memref<96x128xbf16, #tpu.memory_space<vmem>>, vector<16x128xbf16>,
    %73 = vector.extract_strided_slice %70 {offsets = [16, 0], sizes = [16, 128], strides = [1, 1]} : vector<32x128xbf16> to vector<16x128xbf16>
    %c64_56 = arith.constant 64 : index
    %c0_57 = arith.constant 0 : index
    %74 = vector.load %arg6[%c64_56, %c0_57] : memref<96x128xbf16, #tpu.memory_space<vmem>>, vector<16x128xbf16>
    tpu.vector_store %arg6[%c64_56, %c0_57], %73 {strides = array<i32>} : memref<96x128xbf16, #tpu.memory_space<vmem>>, vector<16x128xbf16>,
    %c15_58 = arith.constant 15 : index
    %c0_59 = arith.constant 0 : index
    %75 = vector.load %arg6[%c15_58, %c0_59] : memref<96x128xbf16, #tpu.memory_space<vmem>>, vector<16x128xbf16>
    %c63_60 = arith.constant 63 : index
    %c0_61 = arith.constant 0 : index
    %76 = vector.load %arg6[%c63_60, %c0_61] : memref<96x128xbf16, #tpu.memory_space<vmem>>, vector<16x128xbf16>
    %77 = tpu.concatenate %75, %76 in 0 : vector<16x128xbf16>, vector<16x128xbf16> -> vector<32x128xbf16>
    %c16_62 = arith.constant 16 : index
    %c0_63 = arith.constant 0 : index
    %78 = vector.load %arg6[%c16_62, %c0_63] : memref<96x128xbf16, #tpu.memory_space<vmem>>, vector<16x128xbf16>
    %c64_64 = arith.constant 64 : index
    %c0_65 = arith.constant 0 : index
    %79 = vector.load %arg6[%c64_64, %c0_65] : memref<96x128xbf16, #tpu.memory_space<vmem>>, vector<16x128xbf16>
    %80 = tpu.concatenate %78, %79 in 0 : vector<16x128xbf16>, vector<16x128xbf16> -> vector<32x128xbf16>
    %c17_66 = arith.constant 17 : index
    %c0_67 = arith.constant 0 : index
    %81 = vector.load %arg6[%c17_66, %c0_67] : memref<96x128xbf16, #tpu.memory_space<vmem>>, vector<16x128xbf16>
    %c65_68 = arith.constant 65 : index
    %c0_69 = arith.constant 0 : index
    %82 = vector.load %arg6[%c65_68, %c0_69] : memref<96x128xbf16, #tpu.memory_space<vmem>>, vector<16x128xbf16>
    %83 = tpu.concatenate %81, %82 in 0 : vector<16x128xbf16>, vector<16x128xbf16> -> vector<32x128xbf16>
    %84 = tpu.concatenate %77, %80, %83 in 1 : vector<32x128xbf16>, vector<32x128xbf16>, vector<32x128xbf16> -> vector<32x384xbf16>
    %c2_70 = arith.constant 2 : index
    %c0_71 = arith.constant 0 : index
    %c0_72 = arith.constant 0 : index
    %85 = vector.load %arg3[%c2_70, %c0_71, %c0_72] : memref<8x384x128xbf16, #tpu.memory_space<vmem>>, vector<1x384x128xbf16>
    %86 = vector.shape_cast %85 : vector<1x384x128xbf16> to vector<384x128xbf16>
    %cst_73 = arith.constant dense<0.000000e+00> : vector<32x128xf32>
    %87 = tpu.matmul %84, %86, %cst_73 {dimension_numbers = #tpu.dot_dimension_numbers<[1], [0], [0], [1], [0, 0, 1, 1], [], []>} : vector<32x384xbf16>, vector<384x128xbf16>, vector<32x128xf32> -> vector<32x128xf32>
    %c4 = arith.constant 4 : index
    %c0_74 = arith.constant 0 : index
    %88 = vector.load %arg4[%c4, %c0_74] : memref<12x128xf32, #tpu.memory_space<vmem>>, vector<1x128xf32>
    %89 = vector.broadcast %88 : vector<1x128xf32> to vector<32x128xf32>
    %90 = arith.addf %87, %89 : vector<32x128xf32>
    %cst_75 = arith.constant 0.000000e+00 : f32
    %91 = vector.broadcast %cst_75 : f32 to vector<32x128xf32>
    %92 = arith.maximumf %90, %91 : vector<32x128xf32>
    %93 = arith.truncf %92 : vector<32x128xf32> to vector<32x128xbf16>
    %94 = vector.extract_strided_slice %93 {offsets = [0, 0], sizes = [16, 128], strides = [1, 1]} : vector<32x128xbf16> to vector<16x128xbf16>
    %c16_76 = arith.constant 16 : index
    %c0_77 = arith.constant 0 : index
    %95 = vector.load %arg6[%c16_76, %c0_77] : memref<96x128xbf16, #tpu.memory_space<vmem>>, vector<16x128xbf16>
    tpu.vector_store %arg6[%c16_76, %c0_77], %94 {strides = array<i32>} : memref<96x128xbf16, #tpu.memory_space<vmem>>, vector<16x128xbf16>,
    %96 = vector.extract_strided_slice %93 {offsets = [16, 0], sizes = [16, 128], strides = [1, 1]} : vector<32x128xbf16> to vector<16x128xbf16>
    %c64_78 = arith.constant 64 : index
    %c0_79 = arith.constant 0 : index
    %97 = vector.load %arg6[%c64_78, %c0_79] : memref<96x128xbf16, #tpu.memory_space<vmem>>, vector<16x128xbf16>
    tpu.vector_store %arg6[%c64_78, %c0_79], %96 {strides = array<i32>} : memref<96x128xbf16, #tpu.memory_space<vmem>>, vector<16x128xbf16>,
    %c13_80 = arith.constant 13 : index
    %c0_81 = arith.constant 0 : index
    %98 = vector.load %arg6[%c13_80, %c0_81] : memref<96x128xbf16, #tpu.memory_space<vmem>>, vector<16x128xbf16>
    %c61_82 = arith.constant 61 : index
    %c0_83 = arith.constant 0 : index
    %99 = vector.load %arg6[%c61_82, %c0_83] : memref<96x128xbf16, #tpu.memory_space<vmem>>, vector<16x128xbf16>
    %100 = tpu.concatenate %98, %99 in 0 : vector<16x128xbf16>, vector<16x128xbf16> -> vector<32x128xbf16>
    %c16_84 = arith.constant 16 : index
    %c0_85 = arith.constant 0 : index
    %101 = vector.load %arg6[%c16_84, %c0_85] : memref<96x128xbf16, #tpu.memory_space<vmem>>, vector<16x128xbf16>
    %c64_86 = arith.constant 64 : index
    %c0_87 = arith.constant 0 : index
    %102 = vector.load %arg6[%c64_86, %c0_87] : memref<96x128xbf16, #tpu.memory_space<vmem>>, vector<16x128xbf16>
    %103 = tpu.concatenate %101, %102 in 0 : vector<16x128xbf16>, vector<16x128xbf16> -> vector<32x128xbf16>
    %c19_88 = arith.constant 19 : index
    %c0_89 = arith.constant 0 : index
    %104 = vector.load %arg6[%c19_88, %c0_89] : memref<96x128xbf16, #tpu.memory_space<vmem>>, vector<16x128xbf16>
    %c67_90 = arith.constant 67 : index
    %c0_91 = arith.constant 0 : index
    %105 = vector.load %arg6[%c67_90, %c0_91] : memref<96x128xbf16, #tpu.memory_space<vmem>>, vector<16x128xbf16>
    %106 = tpu.concatenate %104, %105 in 0 : vector<16x128xbf16>, vector<16x128xbf16> -> vector<32x128xbf16>
    %107 = tpu.concatenate %100, %103, %106 in 1 : vector<32x128xbf16>, vector<32x128xbf16>, vector<32x128xbf16> -> vector<32x384xbf16>
    %c3_92 = arith.constant 3 : index
    %c0_93 = arith.constant 0 : index
    %c0_94 = arith.constant 0 : index
    %108 = vector.load %arg3[%c3_92, %c0_93, %c0_94] : memref<8x384x128xbf16, #tpu.memory_space<vmem>>, vector<1x384x128xbf16>
    %109 = vector.shape_cast %108 : vector<1x384x128xbf16> to vector<384x128xbf16>
    %cst_95 = arith.constant dense<0.000000e+00> : vector<32x128xf32>
    %110 = tpu.matmul %107, %109, %cst_95 {dimension_numbers = #tpu.dot_dimension_numbers<[1], [0], [0], [1], [0, 0, 1, 1], [], []>} : vector<32x384xbf16>, vector<384x128xbf16>, vector<32x128xf32> -> vector<32x128xf32>
    %c5 = arith.constant 5 : index
    %c0_96 = arith.constant 0 : index
    %111 = vector.load %arg4[%c5, %c0_96] : memref<12x128xf32, #tpu.memory_space<vmem>>, vector<1x128xf32>
    %112 = vector.broadcast %111 : vector<1x128xf32> to vector<32x128xf32>
    %113 = arith.addf %110, %112 : vector<32x128xf32>
    %cst_97 = arith.constant 0.000000e+00 : f32
    %114 = vector.broadcast %cst_97 : f32 to vector<32x128xf32>
    %115 = arith.maximumf %113, %114 : vector<32x128xf32>
    %116 = arith.truncf %115 : vector<32x128xf32> to vector<32x128xbf16>
    %c2_98 = arith.constant 2 : index
    %c0_99 = arith.constant 0 : index
    %c0_100 = arith.constant 0 : index
    %117 = vector.load %arg2[%c2_98, %c0_99, %c0_100] : memref<4x128x128xbf16, #tpu.memory_space<vmem>>, vector<1x128x128xbf16>
    %118 = vector.shape_cast %117 : vector<1x128x128xbf16> to vector<128x128xbf16>
    %cst_101 = arith.constant dense<0.000000e+00> : vector<32x128xf32>
    %119 = tpu.matmul %116, %118, %cst_101 {dimension_numbers = #tpu.dot_dimension_numbers<[1], [0], [0], [1], [0, 0, 1, 1], [], []>} : vector<32x128xbf16>, vector<128x128xbf16>, vector<32x128xf32> -> vector<32x128xf32>
    %c6 = arith.constant 6 : index
    %c0_102 = arith.constant 0 : index
    %120 = vector.load %arg4[%c6, %c0_102] : memref<12x128xf32, #tpu.memory_space<vmem>>, vector<1x128xf32>
    %121 = vector.broadcast %120 : vector<1x128xf32> to vector<32x128xf32>
    %122 = arith.addf %119, %121 : vector<32x128xf32>
    %cst_103 = arith.constant 0.000000e+00 : f32
    %123 = vector.broadcast %cst_103 : f32 to vector<32x128xf32>
    %124 = arith.maximumf %122, %123 : vector<32x128xf32>
    %125 = arith.truncf %124 : vector<32x128xf32> to vector<32x128xbf16>
    %126 = vector.extract_strided_slice %125 {offsets = [0, 0], sizes = [16, 128], strides = [1, 1]} : vector<32x128xbf16> to vector<16x128xbf16>
    %c16_104 = arith.constant 16 : index
    %c0_105 = arith.constant 0 : index
    %127 = vector.load %arg6[%c16_104, %c0_105] : memref<96x128xbf16, #tpu.memory_space<vmem>>, vector<16x128xbf16>
    tpu.vector_store %arg6[%c16_104, %c0_105], %126 {strides = array<i32>} : memref<96x128xbf16, #tpu.memory_space<vmem>>, vector<16x128xbf16>,
    %128 = vector.extract_strided_slice %125 {offsets = [16, 0], sizes = [16, 128], strides = [1, 1]} : vector<32x128xbf16> to vector<16x128xbf16>
    %c64_106 = arith.constant 64 : index
    %c0_107 = arith.constant 0 : index
    %129 = vector.load %arg6[%c64_106, %c0_107] : memref<96x128xbf16, #tpu.memory_space<vmem>>, vector<16x128xbf16>
    tpu.vector_store %arg6[%c64_106, %c0_107], %128 {strides = array<i32>} : memref<96x128xbf16, #tpu.memory_space<vmem>>, vector<16x128xbf16>,
    %c15_108 = arith.constant 15 : index
    %c0_109 = arith.constant 0 : index
    %130 = vector.load %arg6[%c15_108, %c0_109] : memref<96x128xbf16, #tpu.memory_space<vmem>>, vector<16x128xbf16>
    %c63_110 = arith.constant 63 : index
    %c0_111 = arith.constant 0 : index
    %131 = vector.load %arg6[%c63_110, %c0_111] : memref<96x128xbf16, #tpu.memory_space<vmem>>, vector<16x128xbf16>
    %132 = tpu.concatenate %130, %131 in 0 : vector<16x128xbf16>, vector<16x128xbf16> -> vector<32x128xbf16>
    %c16_112 = arith.constant 16 : index
    %c0_113 = arith.constant 0 : index
    %133 = vector.load %arg6[%c16_112, %c0_113] : memref<96x128xbf16, #tpu.memory_space<vmem>>, vector<16x128xbf16>
    %c64_114 = arith.constant 64 : index
    %c0_115 = arith.constant 0 : index
    %134 = vector.load %arg6[%c64_114, %c0_115] : memref<96x128xbf16, #tpu.memory_space<vmem>>, vector<16x128xbf16>
    %135 = tpu.concatenate %133, %134 in 0 : vector<16x128xbf16>, vector<16x128xbf16> -> vector<32x128xbf16>
    %c17_116 = arith.constant 17 : index
    %c0_117 = arith.constant 0 : index
    %136 = vector.load %arg6[%c17_116, %c0_117] : memref<96x128xbf16, #tpu.memory_space<vmem>>, vector<16x128xbf16>
    %c65_118 = arith.constant 65 : index
    %c0_119 = arith.constant 0 : index
    %137 = vector.load %arg6[%c65_118, %c0_119] : memref<96x128xbf16, #tpu.memory_space<vmem>>, vector<16x128xbf16>
    %138 = tpu.concatenate %136, %137 in 0 : vector<16x128xbf16>, vector<16x128xbf16> -> vector<32x128xbf16>
    %139 = tpu.concatenate %132, %135, %138 in 1 : vector<32x128xbf16>, vector<32x128xbf16>, vector<32x128xbf16> -> vector<32x384xbf16>
    %c4_120 = arith.constant 4 : index
    %c0_121 = arith.constant 0 : index
    %c0_122 = arith.constant 0 : index
    %140 = vector.load %arg3[%c4_120, %c0_121, %c0_122] : memref<8x384x128xbf16, #tpu.memory_space<vmem>>, vector<1x384x128xbf16>
    %141 = vector.shape_cast %140 : vector<1x384x128xbf16> to vector<384x128xbf16>
    %cst_123 = arith.constant dense<0.000000e+00> : vector<32x128xf32>
    %142 = tpu.matmul %139, %141, %cst_123 {dimension_numbers = #tpu.dot_dimension_numbers<[1], [0], [0], [1], [0, 0, 1, 1], [], []>} : vector<32x384xbf16>, vector<384x128xbf16>, vector<32x128xf32> -> vector<32x128xf32>
    %c7 = arith.constant 7 : index
    %c0_124 = arith.constant 0 : index
    %143 = vector.load %arg4[%c7, %c0_124] : memref<12x128xf32, #tpu.memory_space<vmem>>, vector<1x128xf32>
    %144 = vector.broadcast %143 : vector<1x128xf32> to vector<32x128xf32>
    %145 = arith.addf %142, %144 : vector<32x128xf32>
    %cst_125 = arith.constant 0.000000e+00 : f32
    %146 = vector.broadcast %cst_125 : f32 to vector<32x128xf32>
    %147 = arith.maximumf %145, %146 : vector<32x128xf32>
    %148 = arith.truncf %147 : vector<32x128xf32> to vector<32x128xbf16>
    %149 = vector.extract_strided_slice %148 {offsets = [0, 0], sizes = [16, 128], strides = [1, 1]} : vector<32x128xbf16> to vector<16x128xbf16>
    %c16_126 = arith.constant 16 : index
    %c0_127 = arith.constant 0 : index
    %150 = vector.load %arg6[%c16_126, %c0_127] : memref<96x128xbf16, #tpu.memory_space<vmem>>, vector<16x128xbf16>
    tpu.vector_store %arg6[%c16_126, %c0_127], %149 {strides = array<i32>} : memref<96x128xbf16, #tpu.memory_space<vmem>>, vector<16x128xbf16>,
    %151 = vector.extract_strided_slice %148 {offsets = [16, 0], sizes = [16, 128], strides = [1, 1]} : vector<32x128xbf16> to vector<16x128xbf16>
    %c64_128 = arith.constant 64 : index
    %c0_129 = arith.constant 0 : index
    %152 = vector.load %arg6[%c64_128, %c0_129] : memref<96x128xbf16, #tpu.memory_space<vmem>>, vector<16x128xbf16>
    tpu.vector_store %arg6[%c64_128, %c0_129], %151 {strides = array<i32>} : memref<96x128xbf16, #tpu.memory_space<vmem>>, vector<16x128xbf16>,
    %c13_130 = arith.constant 13 : index
    %c0_131 = arith.constant 0 : index
    %153 = vector.load %arg6[%c13_130, %c0_131] : memref<96x128xbf16, #tpu.memory_space<vmem>>, vector<16x128xbf16>
    %c61_132 = arith.constant 61 : index
    %c0_133 = arith.constant 0 : index
    %154 = vector.load %arg6[%c61_132, %c0_133] : memref<96x128xbf16, #tpu.memory_space<vmem>>, vector<16x128xbf16>
    %155 = tpu.concatenate %153, %154 in 0 : vector<16x128xbf16>, vector<16x128xbf16> -> vector<32x128xbf16>
    %c16_134 = arith.constant 16 : index
    %c0_135 = arith.constant 0 : index
    %156 = vector.load %arg6[%c16_134, %c0_135] : memref<96x128xbf16, #tpu.memory_space<vmem>>, vector<16x128xbf16>
    %c64_136 = arith.constant 64 : index
    %c0_137 = arith.constant 0 : index
    %157 = vector.load %arg6[%c64_136, %c0_137] : memref<96x128xbf16, #tpu.memory_space<vmem>>, vector<16x128xbf16>
    %158 = tpu.concatenate %156, %157 in 0 : vector<16x128xbf16>, vector<16x128xbf16> -> vector<32x128xbf16>
    %c19_138 = arith.constant 19 : index
    %c0_139 = arith.constant 0 : index
    %159 = vector.load %arg6[%c19_138, %c0_139] : memref<96x128xbf16, #tpu.memory_space<vmem>>, vector<16x128xbf16>
    %c67_140 = arith.constant 67 : index
    %c0_141 = arith.constant 0 : index
    %160 = vector.load %arg6[%c67_140, %c0_141] : memref<96x128xbf16, #tpu.memory_space<vmem>>, vector<16x128xbf16>
    %161 = tpu.concatenate %159, %160 in 0 : vector<16x128xbf16>, vector<16x128xbf16> -> vector<32x128xbf16>
    %162 = tpu.concatenate %155, %158, %161 in 1 : vector<32x128xbf16>, vector<32x128xbf16>, vector<32x128xbf16> -> vector<32x384xbf16>
    %c5_142 = arith.constant 5 : index
    %c0_143 = arith.constant 0 : index
    %c0_144 = arith.constant 0 : index
    %163 = vector.load %arg3[%c5_142, %c0_143, %c0_144] : memref<8x384x128xbf16, #tpu.memory_space<vmem>>, vector<1x384x128xbf16>
    %164 = vector.shape_cast %163 : vector<1x384x128xbf16> to vector<384x128xbf16>
    %cst_145 = arith.constant dense<0.000000e+00> : vector<32x128xf32>
    %165 = tpu.matmul %162, %164, %cst_145 {dimension_numbers = #tpu.dot_dimension_numbers<[1], [0], [0], [1], [0, 0, 1, 1], [], []>} : vector<32x384xbf16>, vector<384x128xbf16>, vector<32x128xf32> -> vector<32x128xf32>
    %c8 = arith.constant 8 : index
    %c0_146 = arith.constant 0 : index
    %166 = vector.load %arg4[%c8, %c0_146] : memref<12x128xf32, #tpu.memory_space<vmem>>, vector<1x128xf32>
    %167 = vector.broadcast %166 : vector<1x128xf32> to vector<32x128xf32>
    %168 = arith.addf %165, %167 : vector<32x128xf32>
    %cst_147 = arith.constant 0.000000e+00 : f32
    %169 = vector.broadcast %cst_147 : f32 to vector<32x128xf32>
    %170 = arith.maximumf %168, %169 : vector<32x128xf32>
    %171 = arith.truncf %170 : vector<32x128xf32> to vector<32x128xbf16>
    %c3_148 = arith.constant 3 : index
    %c0_149 = arith.constant 0 : index
    %c0_150 = arith.constant 0 : index
    %172 = vector.load %arg2[%c3_148, %c0_149, %c0_150] : memref<4x128x128xbf16, #tpu.memory_space<vmem>>, vector<1x128x128xbf16>
    %173 = vector.shape_cast %172 : vector<1x128x128xbf16> to vector<128x128xbf16>
    %cst_151 = arith.constant dense<0.000000e+00> : vector<32x128xf32>
    %174 = tpu.matmul %171, %173, %cst_151 {dimension_numbers = #tpu.dot_dimension_numbers<[1], [0], [0], [1], [0, 0, 1, 1], [], []>} : vector<32x128xbf16>, vector<128x128xbf16>, vector<32x128xf32> -> vector<32x128xf32>
    %c9 = arith.constant 9 : index
    %c0_152 = arith.constant 0 : index
    %175 = vector.load %arg4[%c9, %c0_152] : memref<12x128xf32, #tpu.memory_space<vmem>>, vector<1x128xf32>
    %176 = vector.broadcast %175 : vector<1x128xf32> to vector<32x128xf32>
    %177 = arith.addf %174, %176 : vector<32x128xf32>
    %cst_153 = arith.constant 0.000000e+00 : f32
    %178 = vector.broadcast %cst_153 : f32 to vector<32x128xf32>
    %179 = arith.maximumf %177, %178 : vector<32x128xf32>
    %180 = arith.truncf %179 : vector<32x128xf32> to vector<32x128xbf16>
    %181 = vector.extract_strided_slice %180 {offsets = [0, 0], sizes = [16, 128], strides = [1, 1]} : vector<32x128xbf16> to vector<16x128xbf16>
    %c16_154 = arith.constant 16 : index
    %c0_155 = arith.constant 0 : index
    %182 = vector.load %arg6[%c16_154, %c0_155] : memref<96x128xbf16, #tpu.memory_space<vmem>>, vector<16x128xbf16>
    tpu.vector_store %arg6[%c16_154, %c0_155], %181 {strides = array<i32>} : memref<96x128xbf16, #tpu.memory_space<vmem>>, vector<16x128xbf16>,
    %183 = vector.extract_strided_slice %180 {offsets = [16, 0], sizes = [16, 128], strides = [1, 1]} : vector<32x128xbf16> to vector<16x128xbf16>
    %c64_156 = arith.constant 64 : index
    %c0_157 = arith.constant 0 : index
    %184 = vector.load %arg6[%c64_156, %c0_157] : memref<96x128xbf16, #tpu.memory_space<vmem>>, vector<16x128xbf16>
    tpu.vector_store %arg6[%c64_156, %c0_157], %183 {strides = array<i32>} : memref<96x128xbf16, #tpu.memory_space<vmem>>, vector<16x128xbf16>,
    %c15_158 = arith.constant 15 : index
    %c0_159 = arith.constant 0 : index
    %185 = vector.load %arg6[%c15_158, %c0_159] : memref<96x128xbf16, #tpu.memory_space<vmem>>, vector<16x128xbf16>
    %c63_160 = arith.constant 63 : index
    %c0_161 = arith.constant 0 : index
    %186 = vector.load %arg6[%c63_160, %c0_161] : memref<96x128xbf16, #tpu.memory_space<vmem>>, vector<16x128xbf16>
    %187 = tpu.concatenate %185, %186 in 0 : vector<16x128xbf16>, vector<16x128xbf16> -> vector<32x128xbf16>
    %c16_162 = arith.constant 16 : index
    %c0_163 = arith.constant 0 : index
    %188 = vector.load %arg6[%c16_162, %c0_163] : memref<96x128xbf16, #tpu.memory_space<vmem>>, vector<16x128xbf16>
    %c64_164 = arith.constant 64 : index
    %c0_165 = arith.constant 0 : index
    %189 = vector.load %arg6[%c64_164, %c0_165] : memref<96x128xbf16, #tpu.memory_space<vmem>>, vector<16x128xbf16>
    %190 = tpu.concatenate %188, %189 in 0 : vector<16x128xbf16>, vector<16x128xbf16> -> vector<32x128xbf16>
    %c17_166 = arith.constant 17 : index
    %c0_167 = arith.constant 0 : index
    %191 = vector.load %arg6[%c17_166, %c0_167] : memref<96x128xbf16, #tpu.memory_space<vmem>>, vector<16x128xbf16>
    %c65_168 = arith.constant 65 : index
    %c0_169 = arith.constant 0 : index
    %192 = vector.load %arg6[%c65_168, %c0_169] : memref<96x128xbf16, #tpu.memory_space<vmem>>, vector<16x128xbf16>
    %193 = tpu.concatenate %191, %192 in 0 : vector<16x128xbf16>, vector<16x128xbf16> -> vector<32x128xbf16>
    %194 = tpu.concatenate %187, %190, %193 in 1 : vector<32x128xbf16>, vector<32x128xbf16>, vector<32x128xbf16> -> vector<32x384xbf16>
    %c6_170 = arith.constant 6 : index
    %c0_171 = arith.constant 0 : index
    %c0_172 = arith.constant 0 : index
    %195 = vector.load %arg3[%c6_170, %c0_171, %c0_172] : memref<8x384x128xbf16, #tpu.memory_space<vmem>>, vector<1x384x128xbf16>
    %196 = vector.shape_cast %195 : vector<1x384x128xbf16> to vector<384x128xbf16>
    %cst_173 = arith.constant dense<0.000000e+00> : vector<32x128xf32>
    %197 = tpu.matmul %194, %196, %cst_173 {dimension_numbers = #tpu.dot_dimension_numbers<[1], [0], [0], [1], [0, 0, 1, 1], [], []>} : vector<32x384xbf16>, vector<384x128xbf16>, vector<32x128xf32> -> vector<32x128xf32>
    %c10 = arith.constant 10 : index
    %c0_174 = arith.constant 0 : index
    %198 = vector.load %arg4[%c10, %c0_174] : memref<12x128xf32, #tpu.memory_space<vmem>>, vector<1x128xf32>
    %199 = vector.broadcast %198 : vector<1x128xf32> to vector<32x128xf32>
    %200 = arith.addf %197, %199 : vector<32x128xf32>
    %cst_175 = arith.constant 0.000000e+00 : f32
    %201 = vector.broadcast %cst_175 : f32 to vector<32x128xf32>
    %202 = arith.maximumf %200, %201 : vector<32x128xf32>
    %203 = arith.truncf %202 : vector<32x128xf32> to vector<32x128xbf16>
    %204 = vector.extract_strided_slice %203 {offsets = [0, 0], sizes = [16, 128], strides = [1, 1]} : vector<32x128xbf16> to vector<16x128xbf16>
    %c16_176 = arith.constant 16 : index
    %c0_177 = arith.constant 0 : index
    %205 = vector.load %arg6[%c16_176, %c0_177] : memref<96x128xbf16, #tpu.memory_space<vmem>>, vector<16x128xbf16>
    tpu.vector_store %arg6[%c16_176, %c0_177], %204 {strides = array<i32>} : memref<96x128xbf16, #tpu.memory_space<vmem>>, vector<16x128xbf16>,
    %206 = vector.extract_strided_slice %203 {offsets = [16, 0], sizes = [16, 128], strides = [1, 1]} : vector<32x128xbf16> to vector<16x128xbf16>
    %c64_178 = arith.constant 64 : index
    %c0_179 = arith.constant 0 : index
    %207 = vector.load %arg6[%c64_178, %c0_179] : memref<96x128xbf16, #tpu.memory_space<vmem>>, vector<16x128xbf16>
    tpu.vector_store %arg6[%c64_178, %c0_179], %206 {strides = array<i32>} : memref<96x128xbf16, #tpu.memory_space<vmem>>, vector<16x128xbf16>,
    %c13_180 = arith.constant 13 : index
    %c0_181 = arith.constant 0 : index
    %208 = vector.load %arg6[%c13_180, %c0_181] : memref<96x128xbf16, #tpu.memory_space<vmem>>, vector<16x128xbf16>
    %c61_182 = arith.constant 61 : index
    %c0_183 = arith.constant 0 : index
    %209 = vector.load %arg6[%c61_182, %c0_183] : memref<96x128xbf16, #tpu.memory_space<vmem>>, vector<16x128xbf16>
    %210 = tpu.concatenate %208, %209 in 0 : vector<16x128xbf16>, vector<16x128xbf16> -> vector<32x128xbf16>
    %c16_184 = arith.constant 16 : index
    %c0_185 = arith.constant 0 : index
    %211 = vector.load %arg6[%c16_184, %c0_185] : memref<96x128xbf16, #tpu.memory_space<vmem>>, vector<16x128xbf16>
    %c64_186 = arith.constant 64 : index
    %c0_187 = arith.constant 0 : index
    %212 = vector.load %arg6[%c64_186, %c0_187] : memref<96x128xbf16, #tpu.memory_space<vmem>>, vector<16x128xbf16>
    %213 = tpu.concatenate %211, %212 in 0 : vector<16x128xbf16>, vector<16x128xbf16> -> vector<32x128xbf16>
    %c19_188 = arith.constant 19 : index
    %c0_189 = arith.constant 0 : index
    %214 = vector.load %arg6[%c19_188, %c0_189] : memref<96x128xbf16, #tpu.memory_space<vmem>>, vector<16x128xbf16>
    %c67_190 = arith.constant 67 : index
    %c0_191 = arith.constant 0 : index
    %215 = vector.load %arg6[%c67_190, %c0_191] : memref<96x128xbf16, #tpu.memory_space<vmem>>, vector<16x128xbf16>
    %216 = tpu.concatenate %214, %215 in 0 : vector<16x128xbf16>, vector<16x128xbf16> -> vector<32x128xbf16>
    %217 = tpu.concatenate %210, %213, %216 in 1 : vector<32x128xbf16>, vector<32x128xbf16>, vector<32x128xbf16> -> vector<32x384xbf16>
    %c7_192 = arith.constant 7 : index
    %c0_193 = arith.constant 0 : index
    %c0_194 = arith.constant 0 : index
    %218 = vector.load %arg3[%c7_192, %c0_193, %c0_194] : memref<8x384x128xbf16, #tpu.memory_space<vmem>>, vector<1x384x128xbf16>
    %219 = vector.shape_cast %218 : vector<1x384x128xbf16> to vector<384x128xbf16>
    %cst_195 = arith.constant dense<0.000000e+00> : vector<32x128xf32>
    %220 = tpu.matmul %217, %219, %cst_195 {dimension_numbers = #tpu.dot_dimension_numbers<[1], [0], [0], [1], [0, 0, 1, 1], [], []>} : vector<32x384xbf16>, vector<384x128xbf16>, vector<32x128xf32> -> vector<32x128xf32>
    %c11 = arith.constant 11 : index
    %c0_196 = arith.constant 0 : index
    %221 = vector.load %arg4[%c11, %c0_196] : memref<12x128xf32, #tpu.memory_space<vmem>>, vector<1x128xf32>
    %222 = vector.broadcast %221 : vector<1x128xf32> to vector<32x128xf32>
    %223 = arith.addf %220, %222 : vector<32x128xf32>
    %cst_197 = arith.constant 0.000000e+00 : f32
    %224 = vector.broadcast %cst_197 : f32 to vector<32x128xf32>
    %225 = arith.maximumf %223, %224 : vector<32x128xf32>
    %226 = vector.shape_cast %225 : vector<32x128xf32> to vector<2x16x128xf32>
    %c0_198 = arith.constant 0 : index
    %c0_199 = arith.constant 0 : index
    %c0_200 = arith.constant 0 : index
    %227 = vector.load %arg5[%c0_198, %c0_199, %c0_200] : memref<2x16x128xf32, #tpu.memory_space<vmem>>, vector<2x16x128xf32>
    tpu.vector_store %arg5[%c0_198, %c0_199, %c0_200], %226 {strides = array<i32>} : memref<2x16x128xf32, #tpu.memory_space<vmem>>, vector<2x16x128xf32>,
    return
  }
  func.func @transform_0(%arg0: i32) -> (i32, i32, i32) {
    %c0_i32 = arith.constant 0 : i32
    %c0_i32_0 = arith.constant 0 : i32
    %c0_i32_1 = arith.constant 0 : i32
    return %arg0, %c0_i32, %c0_i32_0 : i32, i32, i32
  }
  func.func @transform_1(%arg0: i32) -> (i32, i32, i32) {
    %c0_i32 = arith.constant 0 : i32
    %c0_i32_0 = arith.constant 0 : i32
    %c0_i32_1 = arith.constant 0 : i32
    %c0_i32_2 = arith.constant 0 : i32
    return %c0_i32, %c0_i32_0, %c0_i32_1 : i32, i32, i32
  }
  func.func @transform_2(%arg0: i32) -> (i32, i32, i32) {
    %c0_i32 = arith.constant 0 : i32
    %c0_i32_0 = arith.constant 0 : i32
    %c0_i32_1 = arith.constant 0 : i32
    %c0_i32_2 = arith.constant 0 : i32
    return %c0_i32, %c0_i32_0, %c0_i32_1 : i32, i32, i32
  }
  func.func @transform_3(%arg0: i32) -> (i32, i32) {
    %c0_i32 = arith.constant 0 : i32
    %c0_i32_0 = arith.constant 0 : i32
    %c0_i32_1 = arith.constant 0 : i32
    return %c0_i32, %c0_i32_0 : i32, i32
  }
  func.func @transform_4(%arg0: i32) -> (i32, i32, i32) {
    %c0_i32 = arith.constant 0 : i32
    %c0_i32_0 = arith.constant 0 : i32
    %c0_i32_1 = arith.constant 0 : i32
    return %arg0, %c0_i32, %c0_i32_0 : i32, i32, i32
  }
}

</mosaic_0001>

<bundles_post_ra>
// kernel: tpu_custom_call.1
= control target key start
LH: loop header
LB: loop body
LE: loop exit
PB: predicated region body
PF: predicated region fallthrough
CT: control target
= control target key end

     0   :  { %9 = vsyncpa [#allocation4], 0  ;;  %s4937_s0 = inlined_call_operand.hbm [shape: bf16[2,16,128], index: 0, kind: input, shape index: {}]   ;;  %s4938_s1 = inlined_call_operand.hbm [shape: bf16[4,128,128], index: 1, kind: input, shape index: {}]   ;;  %s4939_s2 = inlined_call_operand.hbm [shape: bf16[8,384,128], index: 2, kind: input, shape index: {}]   ;;  %s4940_s3 = inlined_call_operand.hbm [shape: f32[12,128], index: 3, kind: input, shape index: {}]   ;;  %s4941_s4 = inlined_call_operand.hbm [shape: f32[2,16,128], index: 4, kind: output, shape index: {}]  }
   0x1   :  { %10 = vsyncpa [#allocation7], 0 }
   0x2   :  { %11 = vsyncpa [#allocation10], 0 }
   0x3   :  { %12 = vsyncpa [#allocation5], 0  ;;  %s4769_s15 = smov [#allocation6]   ;;  %s4770_s17 = smov [#allocation3]  }
   0x4   :  { %s30_s16 = sshll.u32 %s4769_s15, 4  ;;  %s18_s18 = sshll.u32 %s4770_s17, 4  ;;  %s31_s16 = int_to_ptr.vmem [resolvable:$true] %s30_s16  ;;  %s4804_s18 = int_to_ptr.vmem [resolvable:$true] %s18_s18 }
   0x5   :  { %s4651_s21 = scalar_lea.hbm %s4938_s1, 4096 }
   0x6   :  { %p4652_p0 = scmp.ne.s32.totalorder %s4938_s1, %s4651_s21  ;;  %p4655_p1 = scmp.lt.u32.totalorder %s4651_s21, %s4938_s1 }
   0x8   :  { %p4657_p2 = pnand %p4655_p1, %p4652_p0 }
   0xa   :  { %4660 = shalt.err (!%p4657_p2)
}
   0xb   :  { %s4661_s26 = scalar_lea.vmem %s31_s16, 4096  ;;  %p4666_p4 = scmp.lt.s32.totalorder %s31_s16, %s31_s16 }
   0xc   :  { %p4662_p3 = scmp.ne.s32.totalorder %s31_s16, %s4661_s26  ;;  %p4667_p5 = scmp.lt.s32.totalorder %s4661_s26, %s4661_s26 }
   0xe   :  { %p4668_p6 = por %p4667_p5, %p4666_p4 }
  0x10   :  { %p4669_p7 = pnand %p4668_p6, %p4662_p3 }
  0x12   :  { %4672 = shalt.err (!%p4669_p7)
}
  0x13   :  { %s4771_s27 = smov 64   ;;  %s4772_s28 = smov 4  }
  0x14   :  { %36 = dma.hbm_to_vmem [thread:$0]  %s4938_s1, 4096, %s31_s16, [#allocation7], %s4771_s27, %s4771_s27, %s4772_s28  }
  0x15   :  { %s4673_s7 = scalar_lea.hbm %s4937_s0, 256 }
  0x16   :  { %p4674_p8 = scmp.ne.s32.totalorder %s4937_s0, %s4673_s7  ;;  %p4677_p9 = scmp.lt.u32.totalorder %s4673_s7, %s4937_s0 }
  0x18   :  { %p4679_p10 = pnand %p4677_p9, %p4674_p8 }
  0x1a   :  { %4682 = shalt.err (!%p4679_p10)
}
  0x1b   :  { %s4683_s12 = scalar_lea.vmem %s4804_s18, 256  ;;  %p4688_p12 = scmp.lt.s32.totalorder %s4804_s18, %s4804_s18 }
  0x1c   :  { %p4684_p11 = scmp.ne.s32.totalorder %s4804_s18, %s4683_s12  ;;  %p4689_p13 = scmp.lt.s32.totalorder %s4683_s12, %s4683_s12 }
  0x1e   :  { %p4690_p0 = por %p4689_p13, %p4688_p12 }
  0x20   :  { %p4691_p1 = pnand %p4690_p0, %p4684_p11 }
  0x22   :  { %4694 = shalt.err (!%p4691_p1)
}
  0x23   :  { %24 = dma.hbm_to_vmem [thread:$0]  %s4937_s0, 256, %s4804_s18, [#allocation4], %s4771_s27, %s4771_s27, %s4772_s28  }
  0x24   :  { %s4773_s14 = smov [#allocation8]   ;;  %s4774_s16 = smov [#allocation9]  }
  0x25   :  { %s42_s15 = sshll.u32 %s4773_s14, 4  ;;  %s54_s17 = sshll.u32 %s4774_s16, 4  ;;  %s43_s15 = int_to_ptr.vmem [resolvable:$true] %s42_s15  ;;  %s4841_s17 = int_to_ptr.vmem [resolvable:$true] %s54_s17 }
  0x26   :  { %s4695_s21 = scalar_lea.hbm %s4939_s2, 24576 }
  0x27   :  { %p4696_p2 = scmp.ne.s32.totalorder %s4939_s2, %s4695_s21  ;;  %p4699_p3 = scmp.lt.u32.totalorder %s4695_s21, %s4939_s2 }
  0x29   :  { %p4701_p4 = pnand %p4699_p3, %p4696_p2 }
  0x2b   :  { %4704 = shalt.err (!%p4701_p4)
}
  0x2c   :  { %s4705_s0 = scalar_lea.vmem %s43_s15, 24576  ;;  %p4710_p6 = scmp.lt.s32.totalorder %s43_s15, %s43_s15 }
  0x2d   :  { %p4706_p5 = scmp.ne.s32.totalorder %s43_s15, %s4705_s0  ;;  %p4711_p7 = scmp.lt.s32.totalorder %s4705_s0, %s4705_s0 }
  0x2f   :  { %p4712_p8 = por %p4711_p7, %p4710_p6 }
  0x31   :  { %p4713_p9 = pnand %p4712_p8, %p4706_p5 }
  0x33   :  { %4716 = shalt.err (!%p4713_p9)
}
  0x34   :  { %48 = dma.hbm_to_vmem [thread:$0]  %s4939_s2, 24576, %s43_s15, [#allocation7], %s4771_s27, %s4771_s27, %s4772_s28  }
  0x35   :  { %s4717_s5 = scalar_lea.hbm %s4940_s3, 256 }
  0x36   :  { %p4718_p10 = scmp.ne.s32.totalorder %s4940_s3, %s4717_s5  ;;  %p4721_p11 = scmp.lt.u32.totalorder %s4717_s5, %s4940_s3 }
  0x38   :  { %p4723_p12 = pnand %p4721_p11, %p4718_p10 }
  0x3a   :  { %4726 = shalt.err (!%p4723_p12)
}
  0x3b   :  { %s4727_s10 = scalar_lea.vmem %s4841_s17, 256  ;;  %p4732_p0 = scmp.lt.s32.totalorder %s4841_s17, %s4841_s17 }
  0x3c   :  { %p4728_p13 = scmp.ne.s32.totalorder %s4841_s17, %s4727_s10  ;;  %p4733_p1 = scmp.lt.s32.totalorder %s4727_s10, %s4727_s10 }
  0x3e   :  { %p4734_p2 = por %p4733_p1, %p4732_p0 }
  0x40   :  { %p4735_p3 = pnand %p4734_p2, %p4728_p13 }
  0x42   :  { %4738 = shalt.err (!%p4735_p3)
}
  0x43   :  { %s4775_s2 = smov 128   ;;  %s4776_s27 = smov 8  }
  0x44   :  { %60 = dma.hbm_to_vmem [thread:$0]  %s4940_s3, 256, %s4841_s17, [#allocation10], %s4775_s2, %s4775_s2, %s4776_s27  }
  0x45   :  { %4761 = dma.done.wait [#allocation4], 256  }
  0x46   :  { %4762 = vsyncadd [#allocation4], 4294967040 }
  0x47   :  { %4763 = dma.done.wait [#allocation7], 28672  }
  0x48   :  { %4764 = vsyncadd [#allocation7], 4294938624 }
  0x49   :  { %4765 = dma.done.wait [#allocation10], 256  }
  0x4a   :  { %4766 = vsyncadd [#allocation10], 4294967040  ;;  %v4425_v0 = vld [vmem:[#allocation6] sm:$0xff]   ;;  %v4426_v1 = vld [vmem:[#allocation6 + $0x8] sm:$0xff]   ;;  %v4777_v26 = vmov 0   ;;  %s4778_s3 = smov [#allocation11]  }
  0x4b   :  { %4175 = vmatprep.subr.bf16.mxu0 %v4425_v0  ;;  %v4427_v2 = vld [vmem:[#allocation6 + $0x10] sm:$0xff]   ;;  %v4428_v3 = vld [vmem:[#allocation6 + $0x18] sm:$0xff]   ;;  %v4435_v5 = vld [vmem:[#allocation8 + $0x40] sm:$0xff]   ;;  %74 = vst [vmem:[#allocation2] sm:$0xff] %v4777_v26  ;;  %vm224_vm0 = vsmask.f32 256 }
  0x4c   :  { %4176 = vmatpush3.bf16.msra.mxu0 %v4425_v0  ;;  %v4433_v4 = vld [vmem:[#allocation3] sm:$0xff]   ;;  %v4436_v6 = vld [vmem:[#allocation8] sm:$0xff]   ;;  %3841 = vmatprep.subr.bf16.mxu1 %v4435_v5  ;;  %v4438_v8 = vld [vmem:[#allocation8 + $0x48] sm:$0xff]   ;;  %75 = vst [vmem:[#allocation2 + $0x10] sm:$0xff] %v4777_v26  ;;  %vm254_vm1 = vsmask.f32 7424 }
  0x4d   :  { %4177 = vmatprep.subr.bf16.mxu0 %v4426_v1  ;;  %4191 = vmatprep.mubr.bf16.mxu0 %v4433_v4  ;;  %v4429_v7 = vld [vmem:[#allocation6 + $0x20] sm:$0xff]   ;;  %v4439_v9 = vld [vmem:[#allocation8 + $0x8] sm:$0xff]   ;;  %v4431_v11 = vld [vmem:[#allocation6 + $0x30] sm:$0xff]   ;;  %76 = vst [vmem:[#allocation2 + $0x18] sm:$0xff] %v4777_v26  ;;  %vm583_vm2 = vsmask.f32 1280 }
  0x4e   :  { %3842 = vmatpush3.bf16.msra.mxu1 %v4436_v6  ;;  %v4430_v10 = vld [vmem:[#allocation6 + $0x28] sm:$0xff]   ;;  %v4432_v12 = vld [vmem:[#allocation6 + $0x38] sm:$0xff]   ;;  %v4437_v13 = vld [vmem:[#allocation8 + $0x80] sm:$0xff]   ;;  %77 = vst [vmem:[#allocation2 + $0x28] sm:$0xff] %v4777_v26  ;;  %vm626_vm3 = vsmask.f32 6400 }
  0x4f   :  { %3843 = vmatprep.subr.bf16.mxu1 %v4438_v8  ;;  %v4434_v14 = vld [vmem:[#allocation3 + $0x8] sm:$0xff]   ;;  %v4440_v15 = vld [vmem:[#allocation8 + $0x88] sm:$0xff]   ;;  %v4441_v16 = vld [vmem:[#allocation8 + $0x50] sm:$0xff]   ;;  %s3579_s12 = sshll.u32 %s4778_s3, 4  ;;  %s3580_s12 = int_to_ptr.vmem [resolvable:$true] %s3579_s12 }
  0x50   :  { %4178 = vmatpush3.bf16.msra.mxu0 %v4426_v1  ;;  %v4442_v17 = vld [vmem:[#allocation8 + $0x10] sm:$0xff]   ;;  %v4444_v19 = vld [vmem:[#allocation8 + $0x58] sm:$0xff]   ;;  %v4447_v22 = vld [vmem:[#allocation8 + $0x60] sm:$0xff]   ;;  %s4739_s1 = scalar_lea.vmem %s3580_s12, 512  ;;  %p4744_p5 = scmp.lt.s32.totalorder %s3580_s12, %s3580_s12 }
  0x51   :  { %4179 = vmatprep.subr.bf16.mxu0 %v4427_v2  ;;  %v4443_v18 = vld [vmem:[#allocation8 + $0x90] sm:$0xff]   ;;  %v4445_v20 = vld [vmem:[#allocation8 + $0x18] sm:$0xff]   ;;  %v4448_v23 = vld [vmem:[#allocation8 + $0x20] sm:$0xff]   ;;  %p4740_p4 = scmp.ne.s32.totalorder %s3580_s12, %s4739_s1  ;;  %p4745_p6 = scmp.lt.s32.totalorder %s4739_s1, %s4739_s1 }
  0x52   :  { %3844 = vmatpush3.bf16.msra.mxu1 %v4439_v9  ;;  %v4446_v21 = vld [vmem:[#allocation8 + $0x98] sm:$0xff]   ;;  %v4449_v24 = vld [vmem:[#allocation8 + $0xa0] sm:$0xff]   ;;  %v4450_v25 = vld [vmem:[#allocation8 + $0x68] sm:$0xff]  }
  0x53   :  { %3845 = vmatprep.subr.bf16.mxu1 %v4441_v16  ;;  %v4451_v27 = vld [vmem:[#allocation8 + $0x28] sm:$0xff]   ;;  %v4453_v29 = vld [vmem:[#allocation8 + $0x70] sm:$0xff]   ;;  %v4456_v32 = vld [vmem:[#allocation8 + $0x78] sm:$0xff]   ;;  %p4746_p7 = por %p4745_p6, %p4744_p5 }
  0x54   :  { %4180 = vmatpush3.bf16.msra.mxu0 %v4427_v2  ;;  %v4452_v28 = vld [vmem:[#allocation8 + $0xa8] sm:$0xff]   ;;  %v4454_v30 = vld [vmem:[#allocation8 + $0x30] sm:$0xff]   ;;  %v4457_v33 = vld [vmem:[#allocation8 + $0x38] sm:$0xff]  }
  0x55   :  { %4181 = vmatprep.subr.bf16.mxu0 %v4428_v3  ;;  %v4455_v31 = vld [vmem:[#allocation8 + $0xb0] sm:$0xff]   ;;  %v4458_v34 = vld [vmem:[#allocation8 + $0xb8] sm:$0xff]   ;;  %v4459_v35 = vld [vmem:[#allocation8 + $0x100] sm:$0xff]   ;;  %p4747_p8 = pnand %p4746_p7, %p4740_p4 }
  0x56   :  { %3846 = vmatpush3.bf16.msra.mxu1 %v4442_v17  ;;  %v3593_v36 = vld [vmem:[#allocation9] ss:$0 sm:$0xff]  ;;  %v220_v47 = vld [vmem:[#allocation2] sm:$0x80]  ;;  %v251_v48 = vld [vmem:[#allocation2 + $0x10] sm:$0x1] }
  0x57   :  { %3847 = vmatprep.subr.bf16.mxu1 %v4444_v19  ;;  %v253_v51 = vld [vmem:[#allocation2 + $0x28] sm:$0x1]  ;;  %v226_v54 = vshrl.u32 %v220_v47, 16  ;;  %v258_v55 = vshll.u32 %v251_v48, 16  ;;  %v222_v4 = vld [vmem:[#allocation2 + $0x18] sm:$0x80] }
  0x58   :  { %4182 = vmatpush3.bf16.msra.mxu0 %v4428_v3  ;;  %v271_v57 = vshll.u32 %v253_v51, 16  ;;  %v4461_v16 = vld [vmem:[#allocation8 + $0x108] sm:$0xff]   ;;  %v4464_v19 = vld [vmem:[#allocation8 + $0x140] sm:$0xff]  }
  0x59   :  { %4183 = vmatprep.subr.bf16.mxu0 %v4429_v7  ;;  %v228_v62 = vrot.slane %v226_v54, 7  ;;  %v260_v1 = vrot.slane %v258_v55, 1  ;;  %v4462_v17 = vld [vmem:[#allocation8 + $0xc8] sm:$0xff]   ;;  %v4471_v26 = vld [vmem:[#allocation8 + $0xe0] sm:$0xff]  }
  0x5a   :  { %3848 = vmatpush3.bf16.msra.mxu1 %v4445_v20  ;;  %v273_v3 = vrot.slane %v271_v57, 1  ;;  %v4465_v20 = vld [vmem:[#allocation8 + $0xd0] sm:$0xff]  }
  0x5b   :  { %3849 = vmatprep.subr.bf16.mxu1 %v4447_v22  ;;  %v4467_v22 = vld [vmem:[#allocation8 + $0x148] sm:$0xff]  }
  0x5c   :  { %4184 = vmatpush3.bf16.msra.mxu0 %v4429_v7  ;;  %v4460_v7 = vld [vmem:[#allocation8 + $0xc0] sm:$0xff]  }
  0x5d   :  { %4185 = vmatprep.subr.bf16.mxu0 %v4430_v10 }
  0x5e   :  { %3850 = vmatpush3.bf16.msra.mxu1 %v4448_v23  ;;  %v4468_v23 = vld [vmem:[#allocation8 + $0xd8] sm:$0xff]  }
  0x5f   :  { %3851 = vmatprep.subr.bf16.mxu1 %v4450_v25  ;;  %v4470_v25 = vld [vmem:[#allocation8 + $0x150] sm:$0xff]  }
  0x60   :  { %4186 = vmatpush3.bf16.msra.mxu0 %v4430_v10 }
  0x61   :  { %4187 = vmatprep.subr.bf16.mxu0 %v4431_v11 }
  0x62   :  { %3852 = vmatpush3.bf16.msra.mxu1 %v4451_v27  ;;  %v4472_v27 = vld [vmem:[#allocation8 + $0x128] sm:$0xff]  }
  0x63   :  { %3853 = vmatprep.subr.bf16.mxu1 %v4453_v29  ;;  %v4474_v29 = vld [vmem:[#allocation8 + $0xe8] sm:$0xff]  }
  0x64   :  { %4188 = vmatpush3.bf16.msra.mxu0 %v4431_v11  ;;  %v239_v11 = vshrl.u32 %v222_v4, 16 }
  0x65   :  { %4189 = vmatprep.subr.bf16.mxu0 %v4432_v12 }
  0x66   :  { %3854 = vmatpush3.bf16.msra.mxu1 %v4454_v30  ;;  %v4475_v30 = vld [vmem:[#allocation8 + $0x130] sm:$0xff]  }
  0x67   :  { %3855 = vmatprep.subr.bf16.mxu1 %v4456_v32  ;;  %v4477_v32 = vld [vmem:[#allocation8 + $0xf0] sm:$0xff]  }
  0x68   :  { %4190 = vmatpush3.bf16.msra.mxu0 %v4432_v12 }
  0x69   :  { %4195 = vmatprep.subr.bf16.mxu0 %v4437_v13 }
  0x6a   :  { %3856 = vmatpush3.bf16.msra.mxu1 %v4457_v33  ;;  %v4478_v33 = vld [vmem:[#allocation8 + $0x138] sm:$0xff]  }
  0x6b   :  { %4192 = vmatmul.mubr.bf16.vlgmr.msra.gmra.mrb[0].mxu0 %v4434_v14  ;;  %3879 = vmatprep.subr.bf16.mxu1 %v4459_v35  ;;  %v4480_v35 = vld [vmem:[#allocation8 + $0xf8] sm:$0xff]  }
  0x6c   :  { %4196 = vmatpush3.bf16.msra.mxu0 %v4437_v13  ;;  %v241_v13 = vrot.slane %v239_v11, 7 }
  0x6d   :  { %4197 = vmatprep.subr.bf16.mxu0 %v4440_v15 }
  0x70   :  { %4198 = vmatpush3.bf16.msra.mxu0 %v4440_v15 }
  0x71   :  { %4199 = vmatprep.subr.bf16.mxu0 %v4443_v18 }
  0x74   :  { %4200 = vmatpush3.bf16.msra.mxu0 %v4443_v18  ;;  %v4463_v18 = vld [vmem:[#allocation8 + $0x110] sm:$0xff]  }
  0x75   :  { %4201 = vmatprep.subr.bf16.mxu0 %v4446_v21 }
  0x78   :  { %4202 = vmatpush3.bf16.msra.mxu0 %v4446_v21  ;;  %v4466_v21 = vld [vmem:[#allocation8 + $0x118] sm:$0xff]  }
  0x79   :  { %4203 = vmatprep.subr.bf16.mxu0 %v4449_v24 }
  0x7c   :  { %4204 = vmatpush3.bf16.msra.mxu0 %v4449_v24  ;;  %v4469_v24 = vld [vmem:[#allocation8 + $0x120] sm:$0xff]  }
  0x7d   :  { %4205 = vmatprep.subr.bf16.mxu0 %v4452_v28 }
  0x80   :  { %4206 = vmatpush3.bf16.msra.mxu0 %v4452_v28  ;;  %v4473_v28 = vld [vmem:[#allocation8 + $0x158] sm:$0xff]  }
  0x81   :  { %4207 = vmatprep.subr.bf16.mxu0 %v4455_v31 }
  0x84   :  { %4208 = vmatpush3.bf16.msra.mxu0 %v4455_v31  ;;  %v4476_v31 = vld [vmem:[#allocation8 + $0x160] sm:$0xff]  }
  0x85   :  { %4209 = vmatprep.subr.bf16.mxu0 %v4458_v34 }
  0x88   :  { %4210 = vmatpush3.bf16.msra.mxu0 %v4458_v34  ;;  %v4479_v34 = vld [vmem:[#allocation8 + $0x168] sm:$0xff]  }
  0x89   :  { %4215 = vmatprep.subr.bf16.mxu0 %v4464_v19 }
 0x13e   :  { %v4193_v37 = vpop.f32.mrb[0].mxu0 }
 0x13f   :  { %v206_v38 = vadd.f32 %v4193_v37, %v3593_v36  ;;  %v197_v39 = vpop.f32.mrb[1].mxu0  ;;  %v4482_v37 = vld [vmem:[#allocation8 + $0x178] sm:$0xff]  }
 0x140   :  { %v198_v40 = vadd.f32 %v3593_v36, %v197_v39  ;;  %v4194_v41 = vpop.f32.mrb[2].mxu0 }
 0x141   :  { %v209_v42 = vadd.f32 %v4194_v41, %v3593_v36  ;;  %v200_v43 = vpop.f32.mrb[3].mxu0  ;;  %v214_v45 = vmax.f32 %v206_v38, 0.0  ;;  %v4882_v38 = vld [vmem:[#allocation6 + $0x40] sm:$0xff]  }
 0x142   :  { %v201_v44 = vadd.f32 %v3593_v36, %v200_v43  ;;  %v212_v49 = vmax.f32 %v198_v40, 0.0  ;;  %v4481_v36 = vld [vmem:[#allocation8 + $0x170] sm:$0xff]  }
 0x143   :  { %v215_v46 = vmax.f32 %v209_v42, 0.0  ;;  %v3604_v42 = vld [vmem:[#allocation9 + $0x1] ss:$0 sm:$0xff] }
 0x144   :  { %v213_v50 = vmax.f32 %v201_v44, 0.0 }
 0x145   :  { %v217_v52 = vpack.c.bf16 %v215_v46, %v214_v45 }
 0x146   :  { %v216_v53 = vpack.c.bf16 %v213_v50, %v212_v49 }
 0x147   :  { %v246_v56 = vshll.u32 %v217_v52, 16  ;;  %v243_v60 = vshrl.u32 %v217_v52, 16 }
 0x148   :  { %v230_v58 = vshrl.u32 %v216_v53, 16  ;;  %v233_v59 = vshll.u32 %v216_v53, 16  ;;  %505 = vmatprep.mubr.bf16.mxu1 %v216_v53 }
 0x149   :  { %v268_v61 = vrot.slane %v246_v56, 1  ;;  %v245_v10 = vrot.slane %v243_v60, 7 }
 0x14a   :  { %v232_v63 = vrot.slane %v230_v58, 7  ;;  %v255_v0 = vrot.slane %v233_v59, 1 }
 0x14b   :  { %v269_v2 = vor.u32 %v268_v61, %v243_v60  ;;  %v248_v14 = vor.u32 %v246_v56, %v245_v10  ;;  %v579_v56 = vld [vmem:[#allocation2] sm:$0xc0]  ;;  %v623_v61 = vld [vmem:[#allocation2 + $0x10] sm:$0x3] }
 0x14c   :  { %v235_v5 = vor.u32 %v233_v59, %v232_v63  ;;  %v256_v6 = vor.u32 %v255_v0, %v230_v58  ;;  %v636_v4 = vshrl.u32 %v623_v61, 16 }
 0x14d   :  { %v274_v12 = vsel %vm254_vm1, %v269_v2, %v273_v3  ;;  %v249_v15 = vsel %vm224_vm0, %v241_v13, %v248_v14  ;;  %v585_v2 = vshrl.u32 %v579_v56, 16  ;;  %v588_v3 = vshll.u32 %v579_v56, 16 }
 0x14e   :  { %v236_v8 = vsel %vm224_vm0, %v228_v62, %v235_v5  ;;  %v261_v9 = vsel %vm254_vm1, %v256_v6, %v260_v1  ;;  %v639_v5 = vshll.u32 %v623_v61, 16  ;;  %v638_v11 = vrot.slane %v636_v4, 1  ;;  %v4487_v61 = vld [vmem:[#allocation6 + $0x60] sm:$0xff]   ;;  %v4494_v4 = vld [vmem:[#allocation8 + $0x1c8] sm:$0xff]  }
 0x14f   :  { %506 = vmatmul.mubr.bf16.vlgmr.msra.gmra.mrb[0].mxu1 %v236_v8  ;;  %4211 = vmatprep.mubr.bf16.mxu0 %v261_v9  ;;  %v587_v9 = vrot.slane %v585_v2, 6  ;;  %v590_v10 = vrot.slane %v588_v3, 7  ;;  %v4492_v2 = vld [vmem:[#allocation8 + $0x180] sm:$0xff]  }
 0x150   :  { %513 = vmatprep.mubr.bf16.mxu1 %v217_v52  ;;  %4212 = vmatmul.mubr.bf16.vlgmr.msra.gmra.mrb[4].mxu0 %v274_v12  ;;  %v641_v12 = vrot.slane %v639_v5, 2  ;;  %v4493_v3 = vld [vmem:[#allocation8 + $0x200] sm:$0xff]   ;;  %v4495_v5 = vld [vmem:[#allocation8 + $0x188] sm:$0xff]  }
 0x151   :  { %3880 = vmatpush3.bf16.msra.mxu1 %v4460_v7  ;;  %4216 = vmatpush3.bf16.msra.mxu0 %v4464_v19  ;;  %v591_v19 = vor.u32 %v590_v10, %v587_v9 }
 0x152   :  { %3881 = vmatprep.subr.bf16.mxu1 %v4461_v16  ;;  %4217 = vmatprep.subr.bf16.mxu0 %v4467_v22  ;;  %v581_v16 = vld [vmem:[#allocation2 + $0x18] sm:$0xc0] }
 0x155   :  { %3882 = vmatpush3.bf16.msra.mxu1 %v4462_v17  ;;  %4218 = vmatpush3.bf16.msra.mxu0 %v4467_v22  ;;  %v625_v17 = vld [vmem:[#allocation2 + $0x28] sm:$0x3] }
 0x156   :  { %3883 = vmatprep.subr.bf16.mxu1 %v4463_v18  ;;  %4219 = vmatprep.subr.bf16.mxu0 %v4470_v25 }
 0x157   :  { %514 = vmatmul.mubr.bf16.gmra.mrb[4].mxu1 %v249_v15 }
 0x159   :  { %3884 = vmatpush3.bf16.msra.mxu1 %v4465_v20  ;;  %4220 = vmatpush3.bf16.msra.mxu0 %v4470_v25 }
 0x15a   :  { %3885 = vmatprep.subr.bf16.mxu1 %v4466_v21  ;;  %4221 = vmatprep.subr.bf16.mxu0 %v4473_v28  ;;  %v642_v21 = vor.u32 %v641_v12, %v638_v11  ;;  %v3629_v12 = vld [vmem:[#allocation9 + $0x2] ss:$0 sm:$0xff] }
 0x15d   :  { %3886 = vmatpush3.bf16.msra.mxu1 %v4468_v23  ;;  %4222 = vmatpush3.bf16.msra.mxu0 %v4473_v28  ;;  %v654_v28 = vshrl.u32 %v625_v17, 16 }
 0x15e   :  { %3887 = vmatprep.subr.bf16.mxu1 %v4469_v24  ;;  %4223 = vmatprep.subr.bf16.mxu0 %v4476_v31 }
 0x161   :  { %3888 = vmatpush3.bf16.msra.mxu1 %v4471_v26  ;;  %4224 = vmatpush3.bf16.msra.mxu0 %v4476_v31  ;;  %v603_v26 = vshrl.u32 %v581_v16, 16 }
 0x162   :  { %3889 = vmatprep.subr.bf16.mxu1 %v4472_v27  ;;  %4225 = vmatprep.subr.bf16.mxu0 %v4479_v34  ;;  %v606_v27 = vshll.u32 %v581_v16, 16 }
 0x165   :  { %3890 = vmatpush3.bf16.msra.mxu1 %v4474_v29  ;;  %4226 = vmatpush3.bf16.msra.mxu0 %v4479_v34  ;;  %v657_v29 = vshll.u32 %v625_v17, 16 }
 0x166   :  { %3891 = vmatprep.subr.bf16.mxu1 %v4475_v30  ;;  %4227 = vmatprep.subr.bf16.mxu0 %v4481_v36 }
 0x169   :  { %3892 = vmatpush3.bf16.msra.mxu1 %v4477_v32  ;;  %4228 = vmatpush3.bf16.msra.mxu0 %v4481_v36  ;;  %v605_v36 = vrot.slane %v603_v26, 6 }
 0x16a   :  { %3893 = vmatprep.subr.bf16.mxu1 %v4478_v33  ;;  %4229 = vmatprep.subr.bf16.mxu0 %v4482_v37 }
 0x16d   :  { %3894 = vmatpush3.bf16.msra.mxu1 %v4480_v35  ;;  %4230 = vmatpush3.bf16.msra.mxu0 %v4482_v37  ;;  %v608_v37 = vrot.slane %v606_v27, 7 }
 0x16e   :  { %4235 = vmatprep.subr.bf16.mxu1 %v4882_v38 }
 0x222   :  { %v3857_v39 = vpop.f32.mrb[0].mxu1 }
 0x223   :  { %v3858_v40 = vpop.f32.mrb[1].mxu1  ;;  %v4213_v41 = vpop.f32.mrb[4].mxu0 }
 0x224   :  { %v3859_v43 = vadd.f32 %v3858_v40, %v3857_v39  ;;  %v3860_v44 = vpop.f32.mrb[2].mxu1  ;;  %v556_v45 = vpop.f32.mrb[5].mxu0  ;;  %v656_v39 = vrot.slane %v654_v28, 1  ;;  %v659_v40 = vrot.slane %v657_v29, 2 }
 0x225   :  { %v3861_v46 = vpop.f32.mrb[3].mxu1  ;;  %v4214_v47 = vpop.f32.mrb[6].mxu0 }
 0x226   :  { %v508_v48 = vadd.f32 %v3859_v43, %v3604_v42  ;;  %v3862_v49 = vadd.f32 %v3861_v46, %v3860_v44  ;;  %v559_v50 = vpop.f32.mrb[7].mxu0 }
 0x228   :  { %v557_v51 = vadd.f32 %v556_v45, %v508_v48  ;;  %v511_v52 = vadd.f32 %v3862_v49, %v3604_v42 }
 0x22a   :  { %v560_v53 = vadd.f32 %v559_v50, %v511_v52  ;;  %v3863_v54 = vpop.f32.mrb[4].mxu1  ;;  %v571_v57 = vmax.f32 %v557_v51, 0.0  ;;  %v609_v50 = vor.u32 %v608_v37, %v605_v36  ;;  %v660_v51 = vor.u32 %v659_v40, %v656_v39  ;;  %v4485_v52 = vld [vmem:[#allocation6 + $0x50] sm:$0xff]   ;;  %v4496_v37 = vld [vmem:[#allocation8 + $0x208] sm:$0xff]  }
 0x22b   :  { %v3864_v55 = vpop.f32.mrb[5].mxu1  ;;  %v4497_v39 = vld [vmem:[#allocation8 + $0x1d0] sm:$0xff]  }
 0x22c   :  { %v572_v58 = vmax.f32 %v560_v53, 0.0  ;;  %v3865_v59 = vadd.f32 %v3864_v55, %v3863_v54  ;;  %v3866_v60 = vpop.f32.mrb[6].mxu1  ;;  %v4498_v40 = vld [vmem:[#allocation8 + $0x190] sm:$0xff]  }
 0x22d   :  { %v3867_v62 = vpop.f32.mrb[7].mxu1 }
 0x22e   :  { %v575_v63 = vpack.c.bf16 %v572_v58, %v571_v57  ;;  %v516_v0 = vadd.f32 %v3865_v59, %v3604_v42  ;;  %v3868_v1 = vadd.f32 %v3867_v62, %v3866_v60  ;;  %v4488_v62 = vld [vmem:[#allocation6 + $0x68] sm:$0xff]  }
 0x230   :  { %577 = vst [vmem:[#allocation2 + $0x8] sm:$0xff] %v575_v63  ;;  %v565_v6 = vadd.f32 %v4213_v41, %v516_v0  ;;  %v519_v7 = vadd.f32 %v3868_v1, %v3604_v42  ;;  %893 = vmatprep.mubr.bf16.mxu1 %v575_v63  ;;  %v4484_v41 = vld [vmem:[#allocation6 + $0x48] sm:$0xff]   ;;  %v4489_v63 = vld [vmem:[#allocation6 + $0x70] sm:$0xff]   ;;  %v4490_v0 = vld [vmem:[#allocation6 + $0x78] sm:$0xff]  }
 0x231   :  { %v4491_v1 = vld [vmem:[#allocation8 + $0x1c0] sm:$0xff]  }
 0x232   :  { %v568_v8 = vadd.f32 %v4214_v47, %v519_v7  ;;  %v573_v13 = vmax.f32 %v565_v6, 0.0  ;;  %3927 = vmatprep.subr.bf16.mxu0 %v4491_v1 }
 0x234   :  { %v574_v14 = vmax.f32 %v568_v8, 0.0 }
 0x236   :  { %v576_v15 = vpack.c.bf16 %v574_v14, %v573_v13 }
 0x237   :  { %v580_v18 = vld [vmem:[#allocation2 + $0x8] sm:$0x7f] }
 0x238   :  { %v622_v20 = vld [vmem:[#allocation2 + $0x8] sm:$0xfe]  ;;  %578 = vst [vmem:[#allocation2 + $0x20] sm:$0xff] %v576_v15  ;;  %v593_v22 = vshrl.u32 %v580_v18, 16  ;;  %v596_v23 = vshll.u32 %v580_v18, 16 }
 0x239   :  { %v628_v24 = vshrl.u32 %v622_v20, 16  ;;  %v631_v25 = vshll.u32 %v622_v20, 16 }
 0x23a   :  { %v595_v30 = vrot.slane %v593_v22, 6  ;;  %v598_v31 = vrot.slane %v596_v23, 7 }
 0x23b   :  { %v630_v32 = vrot.slane %v628_v24, 1  ;;  %v633_v33 = vrot.slane %v631_v25, 2 }
 0x23c   :  { %v599_v34 = vor.u32 %v598_v31, %v595_v30 }
 0x23d   :  { %v634_v35 = vor.u32 %v633_v33, %v630_v32 }
 0x23e   :  { %v600_v42 = vsel %vm583_vm2, %v591_v19, %v599_v34 }
 0x23f   :  { %v643_v43 = vsel %vm626_vm3, %v634_v35, %v642_v21  ;;  %894 = vmatmul.mubr.bf16.vlgmr.msra.gmra.mrb[8].mxu1 %v600_v42  ;;  %v582_v44 = vld [vmem:[#allocation2 + $0x20] sm:$0x7f]  ;;  %v4500_v42 = vld [vmem:[#allocation8 + $0x1d8] sm:$0xff]  }
 0x240   :  { %4231 = vmatprep.mubr.bf16.mxu0 %v643_v43  ;;  %v624_v45 = vld [vmem:[#allocation2 + $0x20] sm:$0xfe]  ;;  %901 = vmatprep.mubr.bf16.mxu1 %v576_v15  ;;  %v611_v46 = vshrl.u32 %v582_v44, 16  ;;  %v614_v47 = vshll.u32 %v582_v44, 16  ;;  %v4501_v43 = vld [vmem:[#allocation8 + $0x198] sm:$0xff]  }
 0x241   :  { %v646_v48 = vshrl.u32 %v624_v45, 16  ;;  %v649_v49 = vshll.u32 %v624_v45, 16  ;;  %4236 = vmatpush3.bf16.msra.mxu1 %v4882_v38  ;;  %v4486_v38 = vld [vmem:[#allocation6 + $0x58] sm:$0xff]   ;;  %v4503_v45 = vld [vmem:[#allocation8 + $0x1e0] sm:$0xff]  }
 0x242   :  { %4237 = vmatprep.subr.bf16.mxu1 %v4484_v41  ;;  %v613_v53 = vrot.slane %v611_v46, 6  ;;  %v616_v54 = vrot.slane %v614_v47, 7  ;;  %v4502_v44 = vld [vmem:[#allocation8 + $0x218] sm:$0xff]   ;;  %v4504_v46 = vld [vmem:[#allocation8 + $0x1a0] sm:$0xff]  }
 0x243   :  { %v648_v55 = vrot.slane %v646_v48, 1  ;;  %v651_v56 = vrot.slane %v649_v49, 2  ;;  %v4505_v47 = vld [vmem:[#allocation8 + $0x220] sm:$0xff]   ;;  %v4506_v48 = vld [vmem:[#allocation8 + $0x1e8] sm:$0xff]  }
 0x244   :  { %v617_v57 = vor.u32 %v616_v54, %v613_v53  ;;  %v4507_v49 = vld [vmem:[#allocation8 + $0x1a8] sm:$0xff]   ;;  %v4511_v53 = vld [vmem:[#allocation8 + $0x230] sm:$0xff]   ;;  %v4512_v54 = vld [vmem:[#allocation8 + $0x1f8] sm:$0xff]  }
 0x245   :  { %v652_v58 = vor.u32 %v651_v56, %v648_v55  ;;  %4238 = vmatpush3.bf16.msra.mxu1 %v4484_v41  ;;  %v4499_v41 = vld [vmem:[#allocation8 + $0x210] sm:$0xff]   ;;  %v4513_v55 = vld [vmem:[#allocation8 + $0x1b8] sm:$0xff]  }
 0x246   :  { %4239 = vmatprep.subr.bf16.mxu1 %v4485_v52  ;;  %v618_v59 = vsel %vm583_vm2, %v609_v50, %v617_v57  ;;  %v4508_v50 = vld [vmem:[#allocation8 + $0x228] sm:$0xff]   ;;  %v4514_v56 = vld [vmem:[#allocation8 + $0x238] sm:$0xff]   ;;  %v4515_v57 = vld [vmem:[#allocation8 + $0x280] sm:$0xff]  }
 0x247   :  { %v661_v60 = vsel %vm626_vm3, %v652_v58, %v660_v51  ;;  %902 = vmatmul.mubr.bf16.gmra.mrb[12].mxu1 %v618_v59  ;;  %v4509_v51 = vld [vmem:[#allocation8 + $0x1f0] sm:$0xff]   ;;  %v3654_v58 = vld [vmem:[#allocation9 + $0x3] ss:$0 sm:$0xff] }
 0x248   :  { %4232 = vmatmul.mubr.bf16.vlgmr.msra.gmra.mrb[8].mxu0 %v661_v60 }
 0x249   :  { %4240 = vmatpush3.bf16.msra.mxu1 %v4485_v52  ;;  %3928 = vmatpush3.bf16.msra.mxu0 %v4492_v2  ;;  %v4510_v52 = vld [vmem:[#allocation8 + $0x1b0] sm:$0xff]  }
 0x24a   :  { %4241 = vmatprep.subr.bf16.mxu1 %v4486_v38  ;;  %3929 = vmatprep.subr.bf16.mxu0 %v4494_v4  ;;  %v1092_v4 = vld [vmem:[#allocation2] sm:$0x80] }
 0x24d   :  { %4242 = vmatpush3.bf16.msra.mxu1 %v4486_v38  ;;  %3930 = vmatpush3.bf16.msra.mxu0 %v4495_v5  ;;  %v1122_v5 = vld [vmem:[#allocation2 + $0x10] sm:$0x1] }
 0x24e   :  { %4243 = vmatprep.subr.bf16.mxu1 %v4487_v61  ;;  %3931 = vmatprep.subr.bf16.mxu0 %v4497_v39  ;;  %v4518_v39 = vld [vmem:[#allocation8 + $0x248] sm:$0xff]  }
 0x251   :  { %4244 = vmatpush3.bf16.msra.mxu1 %v4487_v61  ;;  %3932 = vmatpush3.bf16.msra.mxu0 %v4498_v40  ;;  %v4519_v40 = vld [vmem:[#allocation8 + $0x290] sm:$0xff]  }
 0x252   :  { %4245 = vmatprep.subr.bf16.mxu1 %v4488_v62  ;;  %3933 = vmatprep.subr.bf16.mxu0 %v4500_v42  ;;  %v4521_v42 = vld [vmem:[#allocation8 + $0x250] sm:$0xff]  }
 0x255   :  { %4246 = vmatpush3.bf16.msra.mxu1 %v4488_v62  ;;  %3934 = vmatpush3.bf16.msra.mxu0 %v4501_v43  ;;  %v4522_v43 = vld [vmem:[#allocation8 + $0x298] sm:$0xff]  }
 0x256   :  { %4247 = vmatprep.subr.bf16.mxu1 %v4489_v63  ;;  %3935 = vmatprep.subr.bf16.mxu0 %v4503_v45  ;;  %v4524_v45 = vld [vmem:[#allocation8 + $0x258] sm:$0xff]  }
 0x259   :  { %4248 = vmatpush3.bf16.msra.mxu1 %v4489_v63  ;;  %3936 = vmatpush3.bf16.msra.mxu0 %v4504_v46  ;;  %v4525_v46 = vld [vmem:[#allocation8 + $0x2a0] sm:$0xff]  }
 0x25a   :  { %4249 = vmatprep.subr.bf16.mxu1 %v4490_v0  ;;  %3937 = vmatprep.subr.bf16.mxu0 %v4506_v48  ;;  %v4527_v48 = vld [vmem:[#allocation8 + $0x260] sm:$0xff]  }
 0x25d   :  { %4250 = vmatpush3.bf16.msra.mxu1 %v4490_v0  ;;  %3938 = vmatpush3.bf16.msra.mxu0 %v4507_v49  ;;  %v4528_v49 = vld [vmem:[#allocation8 + $0x2a8] sm:$0xff]  }
 0x25e   :  { %4255 = vmatprep.subr.bf16.mxu1 %v4493_v3  ;;  %3939 = vmatprep.subr.bf16.mxu0 %v4509_v51  ;;  %v4530_v51 = vld [vmem:[#allocation8 + $0x268] sm:$0xff]  }
 0x261   :  { %3940 = vmatpush3.bf16.msra.mxu0 %v4510_v52  ;;  %v4531_v52 = vld [vmem:[#allocation8 + $0x2b0] sm:$0xff]  }
 0x262   :  { %3941 = vmatprep.subr.bf16.mxu0 %v4512_v54  ;;  %v4533_v54 = vld [vmem:[#allocation8 + $0x270] sm:$0xff]  }
 0x265   :  { %3942 = vmatpush3.bf16.msra.mxu0 %v4513_v55  ;;  %v4534_v55 = vld [vmem:[#allocation8 + $0x2b8] sm:$0xff]  }
 0x266   :  { %3965 = vmatprep.subr.bf16.mxu0 %v4515_v57  ;;  %v4536_v57 = vld [vmem:[#allocation8 + $0x278] sm:$0xff]  }
 0x312   :  { %v3895_v6 = vpop.f32.mrb[8].mxu1 }
 0x313   :  { %v3896_v7 = vpop.f32.mrb[9].mxu1 }
 0x314   :  { %v3897_v8 = vadd.f32 %v3896_v7, %v3895_v6  ;;  %v3898_v9 = vpop.f32.mrb[10].mxu1 }
 0x315   :  { %v3899_v10 = vpop.f32.mrb[11].mxu1 }
 0x316   :  { %v3900_v11 = vadd.f32 %v3899_v10, %v3898_v9  ;;  %v896_v15 = vadd.f32 %v3897_v8, %v3629_v12  ;;  %v1124_v8 = vld [vmem:[#allocation2 + $0x28] sm:$0x1] }
 0x318   :  { %v899_v22 = vadd.f32 %v3900_v11, %v3629_v12  ;;  %v1097_v11 = vshrl.u32 %v1092_v4, 16 }
 0x31a   :  { %v3901_v13 = vpop.f32.mrb[12].mxu1 }
 0x31b   :  { %v4233_v14 = vpop.f32.mrb[8].mxu0  ;;  %v3902_v16 = vpop.f32.mrb[13].mxu1 }
 0x31c   :  { %v944_v17 = vpop.f32.mrb[9].mxu0  ;;  %v3903_v18 = vadd.f32 %v3902_v16, %v3901_v13  ;;  %v3904_v20 = vpop.f32.mrb[14].mxu1 }
 0x31d   :  { %v945_v19 = vadd.f32 %v944_v17, %v896_v15  ;;  %v4234_v21 = vpop.f32.mrb[10].mxu0  ;;  %v3905_v23 = vpop.f32.mrb[15].mxu1 }
 0x31e   :  { %v947_v24 = vpop.f32.mrb[11].mxu0  ;;  %v904_v25 = vadd.f32 %v3903_v18, %v3629_v12  ;;  %v3906_v26 = vadd.f32 %v3905_v23, %v3904_v20  ;;  %v1099_v20 = vrot.slane %v1097_v11, 7 }
 0x31f   :  { %v948_v27 = vadd.f32 %v947_v24, %v899_v22  ;;  %v959_v29 = vmax.f32 %v945_v19, 0.0 }
 0x320   :  { %v953_v28 = vadd.f32 %v4233_v14, %v904_v25  ;;  %v907_v30 = vadd.f32 %v3906_v26, %v3629_v12  ;;  %v1128_v12 = vshll.u32 %v1122_v5, 16  ;;  %v1141_v14 = vshll.u32 %v1124_v8, 16  ;;  %v1094_v25 = vld [vmem:[#allocation2 + $0x18] sm:$0x80] }
 0x321   :  { %v960_v31 = vmax.f32 %v948_v27, 0.0 }
 0x322   :  { %v956_v32 = vadd.f32 %v4234_v21, %v907_v30  ;;  %v961_v34 = vmax.f32 %v953_v28, 0.0  ;;  %v1130_v22 = vrot.slane %v1128_v12, 1  ;;  %v1143_v24 = vrot.slane %v1141_v14, 1  ;;  %v4516_v28 = vld [vmem:[#allocation8 + $0x240] sm:$0xff]  }
 0x323   :  { %v963_v33 = vpack.c.bf16 %v960_v31, %v959_v29 }
 0x324   :  { %v962_v35 = vmax.f32 %v956_v32, 0.0  ;;  %v1110_v32 = vshrl.u32 %v1094_v25, 16 }
 0x325   :  { %4251 = vmatprep.mubr.bf16.mxu1 %v963_v33 }
 0x326   :  { %v964_v36 = vpack.c.bf16 %v962_v35, %v961_v34  ;;  %v1112_v34 = vrot.slane %v1110_v32, 7 }
 0x328   :  { %4252 = vmatmul.mubr.bf16.vlgmr.msra.gmra.mrb[16].mxu1 %v964_v36 }
 0x329   :  { %4256 = vmatpush3.bf16.msra.mxu1 %v4493_v3 }
 0x32a   :  { %4257 = vmatprep.subr.bf16.mxu1 %v4496_v37 }
 0x32d   :  { %4258 = vmatpush3.bf16.msra.mxu1 %v4496_v37  ;;  %v4517_v37 = vld [vmem:[#allocation8 + $0x288] sm:$0xff]  }
 0x32e   :  { %4259 = vmatprep.subr.bf16.mxu1 %v4499_v41 }
 0x331   :  { %4260 = vmatpush3.bf16.msra.mxu1 %v4499_v41  ;;  %v4520_v41 = vld [vmem:[#allocation8 + $0x2c0] sm:$0xff]  }
 0x332   :  { %4261 = vmatprep.subr.bf16.mxu1 %v4502_v44 }
 0x335   :  { %4262 = vmatpush3.bf16.msra.mxu1 %v4502_v44  ;;  %v4523_v44 = vld [vmem:[#allocation8 + $0x2c8] sm:$0xff]  }
 0x336   :  { %4263 = vmatprep.subr.bf16.mxu1 %v4505_v47 }
 0x339   :  { %4264 = vmatpush3.bf16.msra.mxu1 %v4505_v47  ;;  %v4526_v47 = vld [vmem:[#allocation8 + $0x2d0] sm:$0xff]  }
 0x33a   :  { %4265 = vmatprep.subr.bf16.mxu1 %v4508_v50 }
 0x33d   :  { %4266 = vmatpush3.bf16.msra.mxu1 %v4508_v50  ;;  %v4529_v50 = vld [vmem:[#allocation8 + $0x2d8] sm:$0xff]  }
 0x33e   :  { %4267 = vmatprep.subr.bf16.mxu1 %v4511_v53 }
 0x341   :  { %4268 = vmatpush3.bf16.msra.mxu1 %v4511_v53  ;;  %v4532_v53 = vld [vmem:[#allocation8 + $0x2e0] sm:$0xff]  }
 0x342   :  { %4269 = vmatprep.subr.bf16.mxu1 %v4514_v56 }
 0x345   :  { %4270 = vmatpush3.bf16.msra.mxu1 %v4514_v56  ;;  %v4535_v56 = vld [vmem:[#allocation8 + $0x2e8] sm:$0xff]  }
 0x346   :  { %4275 = vmatprep.subr.bf16.mxu1 %v4520_v41 }
 0x3fb   :  { %v4253_v59 = vpop.f32.mrb[16].mxu1 }
 0x3fc   :  { %v1078_v60 = vadd.f32 %v4253_v59, %v3654_v58  ;;  %v1069_v38 = vpop.f32.mrb[17].mxu1  ;;  %v4538_v59 = vld [vmem:[#allocation8 + $0x2f8] sm:$0xff]  }
 0x3fd   :  { %v1070_v61 = vadd.f32 %v3654_v58, %v1069_v38  ;;  %v4254_v62 = vpop.f32.mrb[18].mxu1 }
 0x3fe   :  { %v1081_v63 = vadd.f32 %v4254_v62, %v3654_v58  ;;  %v1072_v0 = vpop.f32.mrb[19].mxu1  ;;  %v1086_v2 = vmax.f32 %v1078_v60, 0.0  ;;  %v4894_v60 = vld [vmem:[#allocation6 + $0x80] sm:$0xff]  }
 0x3ff   :  { %v1073_v1 = vadd.f32 %v3654_v58, %v1072_v0  ;;  %v1084_v6 = vmax.f32 %v1070_v61, 0.0  ;;  %v4537_v58 = vld [vmem:[#allocation8 + $0x2f0] sm:$0xff]  }
 0x400   :  { %v1087_v3 = vmax.f32 %v1081_v63, 0.0  ;;  %v3663_v63 = vld [vmem:[#allocation9 + $0x4] ss:$0 sm:$0xff] }
 0x401   :  { %v1085_v7 = vmax.f32 %v1073_v1, 0.0 }
 0x402   :  { %v1089_v9 = vpack.c.bf16 %v1087_v3, %v1086_v2 }
 0x403   :  { %v1088_v10 = vpack.c.bf16 %v1085_v7, %v1084_v6 }
 0x404   :  { %v1117_v13 = vshll.u32 %v1089_v9, 16  ;;  %v1114_v17 = vshrl.u32 %v1089_v9, 16 }
 0x405   :  { %v1101_v15 = vshrl.u32 %v1088_v10, 16  ;;  %v1104_v16 = vshll.u32 %v1088_v10, 16  ;;  %1376 = vmatprep.mubr.bf16.mxu0 %v1088_v10 }
 0x406   :  { %v1138_v18 = vrot.slane %v1117_v13, 1  ;;  %v1116_v31 = vrot.slane %v1114_v17, 7 }
 0x407   :  { %v1103_v19 = vrot.slane %v1101_v15, 7  ;;  %v1125_v21 = vrot.slane %v1104_v16, 1 }
 0x408   :  { %v1139_v23 = vor.u32 %v1138_v18, %v1114_v17  ;;  %v1119_v35 = vor.u32 %v1117_v13, %v1116_v31  ;;  %v1450_v13 = vld [vmem:[#allocation2] sm:$0xc0]  ;;  %v1493_v18 = vld [vmem:[#allocation2 + $0x10] sm:$0x3] }
 0x409   :  { %v1106_v26 = vor.u32 %v1104_v16, %v1103_v19  ;;  %v1126_v27 = vor.u32 %v1125_v21, %v1101_v15  ;;  %v1505_v25 = vshrl.u32 %v1493_v18, 16 }
 0x40a   :  { %v1144_v33 = vsel %vm254_vm1, %v1139_v23, %v1143_v24  ;;  %v1120_v36 = vsel %vm224_vm0, %v1112_v34, %v1119_v35  ;;  %v1455_v23 = vshrl.u32 %v1450_v13, 16  ;;  %v1458_v24 = vshll.u32 %v1450_v13, 16 }
 0x40b   :  { %v1107_v29 = vsel %vm224_vm0, %v1099_v20, %v1106_v26  ;;  %v1131_v30 = vsel %vm254_vm1, %v1126_v27, %v1130_v22  ;;  %v1508_v26 = vshll.u32 %v1493_v18, 16  ;;  %v1507_v32 = vrot.slane %v1505_v25, 1  ;;  %v4543_v18 = vld [vmem:[#allocation6 + $0xa0] sm:$0xff]   ;;  %v4550_v25 = vld [vmem:[#allocation8 + $0x348] sm:$0xff]  }
 0x40c   :  { %1377 = vmatmul.mubr.bf16.vlgmr.msra.gmra.mrb[12].mxu0 %v1107_v29  ;;  %4271 = vmatprep.mubr.bf16.mxu1 %v1131_v30  ;;  %v1457_v30 = vrot.slane %v1455_v23, 6  ;;  %v1460_v31 = vrot.slane %v1458_v24, 7  ;;  %v4548_v23 = vld [vmem:[#allocation8 + $0x300] sm:$0xff]  }
 0x40d   :  { %1384 = vmatprep.mubr.bf16.mxu0 %v1089_v9  ;;  %4272 = vmatmul.mubr.bf16.vlgmr.msra.gmra.mrb[20].mxu1 %v1144_v33  ;;  %v1510_v33 = vrot.slane %v1508_v26, 2  ;;  %v4549_v24 = vld [vmem:[#allocation8 + $0x380] sm:$0xff]   ;;  %v4551_v26 = vld [vmem:[#allocation8 + $0x308] sm:$0xff]  }
 0x40e   :  { %3966 = vmatpush3.bf16.msra.mxu0 %v4516_v28  ;;  %4276 = vmatpush3.bf16.msra.mxu1 %v4520_v41  ;;  %v1461_v41 = vor.u32 %v1460_v31, %v1457_v30 }
 0x40f   :  { %3967 = vmatprep.subr.bf16.mxu0 %v4517_v37  ;;  %4277 = vmatprep.subr.bf16.mxu1 %v4523_v44  ;;  %v1452_v37 = vld [vmem:[#allocation2 + $0x18] sm:$0xc0] }
 0x412   :  { %3968 = vmatpush3.bf16.msra.mxu0 %v4518_v39  ;;  %4278 = vmatpush3.bf16.msra.mxu1 %v4523_v44  ;;  %v1495_v39 = vld [vmem:[#allocation2 + $0x28] sm:$0x3] }
 0x413   :  { %3969 = vmatprep.subr.bf16.mxu0 %v4519_v40  ;;  %4279 = vmatprep.subr.bf16.mxu1 %v4526_v47 }
 0x414   :  { %1385 = vmatmul.mubr.bf16.gmra.mrb[16].mxu0 %v1120_v36 }
 0x416   :  { %3970 = vmatpush3.bf16.msra.mxu0 %v4521_v42  ;;  %4280 = vmatpush3.bf16.msra.mxu1 %v4526_v47 }
 0x417   :  { %3971 = vmatprep.subr.bf16.mxu0 %v4522_v43  ;;  %4281 = vmatprep.subr.bf16.mxu1 %v4529_v50  ;;  %v1511_v43 = vor.u32 %v1510_v33, %v1507_v32  ;;  %v3688_v33 = vld [vmem:[#allocation9 + $0x5] ss:$0 sm:$0xff] }
 0x41a   :  { %3972 = vmatpush3.bf16.msra.mxu0 %v4524_v45  ;;  %4282 = vmatpush3.bf16.msra.mxu1 %v4529_v50  ;;  %v1523_v50 = vshrl.u32 %v1495_v39, 16 }
 0x41b   :  { %3973 = vmatprep.subr.bf16.mxu0 %v4525_v46  ;;  %4283 = vmatprep.subr.bf16.mxu1 %v4532_v53 }
 0x41e   :  { %3974 = vmatpush3.bf16.msra.mxu0 %v4527_v48  ;;  %4284 = vmatpush3.bf16.msra.mxu1 %v4532_v53  ;;  %v1473_v48 = vshrl.u32 %v1452_v37, 16 }
 0x41f   :  { %3975 = vmatprep.subr.bf16.mxu0 %v4528_v49  ;;  %4285 = vmatprep.subr.bf16.mxu1 %v4535_v56  ;;  %v1476_v49 = vshll.u32 %v1452_v37, 16 }
 0x422   :  { %3976 = vmatpush3.bf16.msra.mxu0 %v4530_v51  ;;  %4286 = vmatpush3.bf16.msra.mxu1 %v4535_v56  ;;  %v1526_v51 = vshll.u32 %v1495_v39, 16 }
 0x423   :  { %3977 = vmatprep.subr.bf16.mxu0 %v4531_v52  ;;  %4287 = vmatprep.subr.bf16.mxu1 %v4537_v58 }
 0x426   :  { %3978 = vmatpush3.bf16.msra.mxu0 %v4533_v54  ;;  %4288 = vmatpush3.bf16.msra.mxu1 %v4537_v58  ;;  %v1475_v58 = vrot.slane %v1473_v48, 6 }
 0x427   :  { %3979 = vmatprep.subr.bf16.mxu0 %v4534_v55  ;;  %4289 = vmatprep.subr.bf16.mxu1 %v4538_v59 }
 0x42a   :  { %3980 = vmatpush3.bf16.msra.mxu0 %v4536_v57  ;;  %4290 = vmatpush3.bf16.msra.mxu1 %v4538_v59  ;;  %v1478_v59 = vrot.slane %v1476_v49, 7 }
 0x42b   :  { %4295 = vmatprep.subr.bf16.mxu0 %v4894_v60 }
 0x4df   :  { %v3943_v38 = vpop.f32.mrb[12].mxu0 }
 0x4e0   :  { %v3944_v61 = vpop.f32.mrb[13].mxu0  ;;  %v4273_v62 = vpop.f32.mrb[20].mxu1 }
 0x4e1   :  { %v3945_v0 = vadd.f32 %v3944_v61, %v3943_v38  ;;  %v3946_v1 = vpop.f32.mrb[14].mxu0  ;;  %v1427_v2 = vpop.f32.mrb[21].mxu1  ;;  %v1525_v38 = vrot.slane %v1523_v50, 1  ;;  %v1528_v61 = vrot.slane %v1526_v51, 2 }
 0x4e2   :  { %v3947_v3 = vpop.f32.mrb[15].mxu0  ;;  %v4274_v4 = vpop.f32.mrb[22].mxu1 }
 0x4e3   :  { %v1379_v5 = vadd.f32 %v3945_v0, %v3663_v63  ;;  %v3948_v6 = vadd.f32 %v3947_v3, %v3946_v1  ;;  %v1430_v7 = vpop.f32.mrb[23].mxu1 }
 0x4e5   :  { %v1428_v8 = vadd.f32 %v1427_v2, %v1379_v5  ;;  %v1382_v9 = vadd.f32 %v3948_v6, %v3663_v63 }
 0x4e7   :  { %v1431_v10 = vadd.f32 %v1430_v7, %v1382_v9  ;;  %v3949_v11 = vpop.f32.mrb[16].mxu0  ;;  %v1442_v14 = vmax.f32 %v1428_v8, 0.0  ;;  %v1479_v7 = vor.u32 %v1478_v59, %v1475_v58  ;;  %v1529_v8 = vor.u32 %v1528_v61, %v1525_v38  ;;  %v4541_v9 = vld [vmem:[#allocation6 + $0x90] sm:$0xff]   ;;  %v4552_v59 = vld [vmem:[#allocation8 + $0x388] sm:$0xff]  }
 0x4e8   :  { %v3950_v12 = vpop.f32.mrb[17].mxu0  ;;  %v4553_v38 = vld [vmem:[#allocation8 + $0x350] sm:$0xff]  }
 0x4e9   :  { %v1443_v15 = vmax.f32 %v1431_v10, 0.0  ;;  %v3951_v16 = vadd.f32 %v3950_v12, %v3949_v11  ;;  %v3952_v17 = vpop.f32.mrb[18].mxu0  ;;  %v4554_v61 = vld [vmem:[#allocation8 + $0x310] sm:$0xff]  }
 0x4ea   :  { %v3953_v19 = vpop.f32.mrb[19].mxu0 }
 0x4eb   :  { %v1446_v20 = vpack.c.bf16 %v1443_v15, %v1442_v14  ;;  %v1387_v21 = vadd.f32 %v3951_v16, %v3663_v63  ;;  %v3954_v22 = vadd.f32 %v3953_v19, %v3952_v17  ;;  %v4544_v19 = vld [vmem:[#allocation6 + $0xa8] sm:$0xff]  }
 0x4ed   :  { %1448 = vst [vmem:[#allocation2 + $0x8] sm:$0xff] %v1446_v20  ;;  %v1436_v27 = vadd.f32 %v4273_v62, %v1387_v21  ;;  %v1390_v28 = vadd.f32 %v3954_v22, %v3663_v63  ;;  %1762 = vmatprep.mubr.bf16.mxu0 %v1446_v20  ;;  %v4540_v62 = vld [vmem:[#allocation6 + $0x88] sm:$0xff]   ;;  %v4545_v20 = vld [vmem:[#allocation6 + $0xb0] sm:$0xff]   ;;  %v4546_v21 = vld [vmem:[#allocation6 + $0xb8] sm:$0xff]  }
 0x4ee   :  { %v4547_v22 = vld [vmem:[#allocation8 + $0x340] sm:$0xff]  }
 0x4ef   :  { %v1439_v29 = vadd.f32 %v4274_v4, %v1390_v28  ;;  %v1444_v34 = vmax.f32 %v1436_v27, 0.0  ;;  %4013 = vmatprep.subr.bf16.mxu1 %v4547_v22 }
 0x4f1   :  { %v1445_v35 = vmax.f32 %v1439_v29, 0.0 }
 0x4f3   :  { %v1447_v36 = vpack.c.bf16 %v1445_v35, %v1444_v34 }
 0x4f4   :  { %v1451_v40 = vld [vmem:[#allocation2 + $0x8] sm:$0x7f] }
 0x4f5   :  { %v1492_v42 = vld [vmem:[#allocation2 + $0x8] sm:$0xfe]  ;;  %1449 = vst [vmem:[#allocation2 + $0x20] sm:$0xff] %v1447_v36  ;;  %v1463_v44 = vshrl.u32 %v1451_v40, 16  ;;  %v1466_v45 = vshll.u32 %v1451_v40, 16 }
 0x4f6   :  { %v1497_v46 = vshrl.u32 %v1492_v42, 16  ;;  %v1500_v47 = vshll.u32 %v1492_v42, 16 }
 0x4f7   :  { %v1465_v52 = vrot.slane %v1463_v44, 6  ;;  %v1468_v53 = vrot.slane %v1466_v45, 7 }
 0x4f8   :  { %v1499_v54 = vrot.slane %v1497_v46, 1  ;;  %v1502_v55 = vrot.slane %v1500_v47, 2 }
 0x4f9   :  { %v1469_v56 = vor.u32 %v1468_v53, %v1465_v52 }
 0x4fa   :  { %v1503_v57 = vor.u32 %v1502_v55, %v1499_v54 }
 0x4fb   :  { %v1470_v63 = vsel %vm583_vm2, %v1461_v41, %v1469_v56 }
 0x4fc   :  { %v1512_v0 = vsel %vm626_vm3, %v1503_v57, %v1511_v43  ;;  %1763 = vmatmul.mubr.bf16.vlgmr.msra.gmra.mrb[20].mxu0 %v1470_v63  ;;  %v1453_v1 = vld [vmem:[#allocation2 + $0x20] sm:$0x7f]  ;;  %v4556_v63 = vld [vmem:[#allocation8 + $0x358] sm:$0xff]  }
 0x4fd   :  { %4291 = vmatprep.mubr.bf16.mxu1 %v1512_v0  ;;  %v1494_v2 = vld [vmem:[#allocation2 + $0x20] sm:$0xfe]  ;;  %1770 = vmatprep.mubr.bf16.mxu0 %v1447_v36  ;;  %v1481_v3 = vshrl.u32 %v1453_v1, 16  ;;  %v1484_v4 = vshll.u32 %v1453_v1, 16  ;;  %v4557_v0 = vld [vmem:[#allocation8 + $0x318] sm:$0xff]  }
 0x4fe   :  { %v1515_v5 = vshrl.u32 %v1494_v2, 16  ;;  %v1518_v6 = vshll.u32 %v1494_v2, 16  ;;  %4296 = vmatpush3.bf16.msra.mxu0 %v4894_v60  ;;  %v4542_v60 = vld [vmem:[#allocation6 + $0x98] sm:$0xff]   ;;  %v4559_v2 = vld [vmem:[#allocation8 + $0x360] sm:$0xff]  }
 0x4ff   :  { %4297 = vmatprep.subr.bf16.mxu0 %v4540_v62  ;;  %v1483_v10 = vrot.slane %v1481_v3, 6  ;;  %v1486_v11 = vrot.slane %v1484_v4, 7  ;;  %v4558_v1 = vld [vmem:[#allocation8 + $0x398] sm:$0xff]   ;;  %v4560_v3 = vld [vmem:[#allocation8 + $0x320] sm:$0xff]  }
 0x500   :  { %v1517_v12 = vrot.slane %v1515_v5, 1  ;;  %v1520_v13 = vrot.slane %v1518_v6, 2  ;;  %v4561_v4 = vld [vmem:[#allocation8 + $0x3a0] sm:$0xff]   ;;  %v4562_v5 = vld [vmem:[#allocation8 + $0x368] sm:$0xff]  }
 0x501   :  { %v1487_v14 = vor.u32 %v1486_v11, %v1483_v10  ;;  %v4563_v6 = vld [vmem:[#allocation8 + $0x328] sm:$0xff]   ;;  %v4567_v10 = vld [vmem:[#allocation8 + $0x3b0] sm:$0xff]   ;;  %v4568_v11 = vld [vmem:[#allocation8 + $0x378] sm:$0xff]  }
 0x502   :  { %v1521_v15 = vor.u32 %v1520_v13, %v1517_v12  ;;  %4298 = vmatpush3.bf16.msra.mxu0 %v4540_v62  ;;  %v4555_v62 = vld [vmem:[#allocation8 + $0x390] sm:$0xff]   ;;  %v4569_v12 = vld [vmem:[#allocation8 + $0x338] sm:$0xff]  }
 0x503   :  { %4299 = vmatprep.subr.bf16.mxu0 %v4541_v9  ;;  %v1488_v16 = vsel %vm583_vm2, %v1479_v7, %v1487_v14  ;;  %v4564_v7 = vld [vmem:[#allocation8 + $0x3a8] sm:$0xff]   ;;  %v4570_v13 = vld [vmem:[#allocation8 + $0x3b8] sm:$0xff]   ;;  %v4571_v14 = vld [vmem:[#allocation8 + $0x400] sm:$0xff]  }
 0x504   :  { %v1530_v17 = vsel %vm626_vm3, %v1521_v15, %v1529_v8  ;;  %1771 = vmatmul.mubr.bf16.gmra.mrb[24].mxu0 %v1488_v16  ;;  %v4565_v8 = vld [vmem:[#allocation8 + $0x370] sm:$0xff]   ;;  %v3713_v15 = vld [vmem:[#allocation9 + $0x6] ss:$0 sm:$0xff] }
 0x505   :  { %4292 = vmatmul.mubr.bf16.vlgmr.msra.gmra.mrb[24].mxu1 %v1530_v17 }
 0x506   :  { %4300 = vmatpush3.bf16.msra.mxu0 %v4541_v9  ;;  %4014 = vmatpush3.bf16.msra.mxu1 %v4548_v23  ;;  %v4566_v9 = vld [vmem:[#allocation8 + $0x330] sm:$0xff]  }
 0x507   :  { %4301 = vmatprep.subr.bf16.mxu0 %v4542_v60  ;;  %4015 = vmatprep.subr.bf16.mxu1 %v4550_v25  ;;  %v1961_v25 = vld [vmem:[#allocation2] sm:$0x80] }
 0x50a   :  { %4302 = vmatpush3.bf16.msra.mxu0 %v4542_v60  ;;  %4016 = vmatpush3.bf16.msra.mxu1 %v4551_v26  ;;  %v1991_v26 = vld [vmem:[#allocation2 + $0x10] sm:$0x1] }
 0x50b   :  { %4303 = vmatprep.subr.bf16.mxu0 %v4543_v18  ;;  %4017 = vmatprep.subr.bf16.mxu1 %v4553_v38  ;;  %v4574_v38 = vld [vmem:[#allocation8 + $0x3c8] sm:$0xff]  }
 0x50e   :  { %4304 = vmatpush3.bf16.msra.mxu0 %v4543_v18  ;;  %4018 = vmatpush3.bf16.msra.mxu1 %v4554_v61  ;;  %v4575_v61 = vld [vmem:[#allocation8 + $0x410] sm:$0xff]  }
 0x50f   :  { %4305 = vmatprep.subr.bf16.mxu0 %v4544_v19  ;;  %4019 = vmatprep.subr.bf16.mxu1 %v4556_v63  ;;  %v4577_v63 = vld [vmem:[#allocation8 + $0x3d0] sm:$0xff]  }
 0x512   :  { %4306 = vmatpush3.bf16.msra.mxu0 %v4544_v19  ;;  %4020 = vmatpush3.bf16.msra.mxu1 %v4557_v0  ;;  %v4578_v0 = vld [vmem:[#allocation8 + $0x418] sm:$0xff]  }
 0x513   :  { %4307 = vmatprep.subr.bf16.mxu0 %v4545_v20  ;;  %4021 = vmatprep.subr.bf16.mxu1 %v4559_v2  ;;  %v4580_v2 = vld [vmem:[#allocation8 + $0x3d8] sm:$0xff]  }
 0x516   :  { %4308 = vmatpush3.bf16.msra.mxu0 %v4545_v20  ;;  %4022 = vmatpush3.bf16.msra.mxu1 %v4560_v3  ;;  %v4581_v3 = vld [vmem:[#allocation8 + $0x420] sm:$0xff]  }
 0x517   :  { %4309 = vmatprep.subr.bf16.mxu0 %v4546_v21  ;;  %4023 = vmatprep.subr.bf16.mxu1 %v4562_v5  ;;  %v4583_v5 = vld [vmem:[#allocation8 + $0x3e0] sm:$0xff]  }
 0x51a   :  { %4310 = vmatpush3.bf16.msra.mxu0 %v4546_v21  ;;  %4024 = vmatpush3.bf16.msra.mxu1 %v4563_v6  ;;  %v4584_v6 = vld [vmem:[#allocation8 + $0x428] sm:$0xff]  }
 0x51b   :  { %4315 = vmatprep.subr.bf16.mxu0 %v4549_v24  ;;  %4025 = vmatprep.subr.bf16.mxu1 %v4565_v8  ;;  %v4586_v8 = vld [vmem:[#allocation8 + $0x3e8] sm:$0xff]  }
 0x51e   :  { %4026 = vmatpush3.bf16.msra.mxu1 %v4566_v9  ;;  %v4587_v9 = vld [vmem:[#allocation8 + $0x430] sm:$0xff]  }
 0x51f   :  { %4027 = vmatprep.subr.bf16.mxu1 %v4568_v11  ;;  %v4589_v11 = vld [vmem:[#allocation8 + $0x3f0] sm:$0xff]  }
 0x522   :  { %4028 = vmatpush3.bf16.msra.mxu1 %v4569_v12  ;;  %v4590_v12 = vld [vmem:[#allocation8 + $0x438] sm:$0xff]  }
 0x523   :  { %4051 = vmatprep.subr.bf16.mxu1 %v4571_v14  ;;  %v4592_v14 = vld [vmem:[#allocation8 + $0x3f8] sm:$0xff]  }
 0x5cf   :  { %v3981_v27 = vpop.f32.mrb[20].mxu0 }
 0x5d0   :  { %v3982_v28 = vpop.f32.mrb[21].mxu0 }
 0x5d1   :  { %v3983_v29 = vadd.f32 %v3982_v28, %v3981_v27  ;;  %v3984_v30 = vpop.f32.mrb[22].mxu0 }
 0x5d2   :  { %v3985_v31 = vpop.f32.mrb[23].mxu0 }
 0x5d3   :  { %v3986_v32 = vadd.f32 %v3985_v31, %v3984_v30  ;;  %v1765_v36 = vadd.f32 %v3983_v29, %v3688_v33  ;;  %v1993_v29 = vld [vmem:[#allocation2 + $0x28] sm:$0x1] }
 0x5d5   :  { %v1768_v44 = vadd.f32 %v3986_v32, %v3688_v33  ;;  %v1966_v32 = vshrl.u32 %v1961_v25, 16 }
 0x5d7   :  { %v3987_v34 = vpop.f32.mrb[24].mxu0 }
 0x5d8   :  { %v4293_v35 = vpop.f32.mrb[24].mxu1  ;;  %v3988_v37 = vpop.f32.mrb[25].mxu0 }
 0x5d9   :  { %v1813_v39 = vpop.f32.mrb[25].mxu1  ;;  %v3989_v40 = vadd.f32 %v3988_v37, %v3987_v34  ;;  %v3990_v42 = vpop.f32.mrb[26].mxu0 }
 0x5da   :  { %v1814_v41 = vadd.f32 %v1813_v39, %v1765_v36  ;;  %v4294_v43 = vpop.f32.mrb[26].mxu1  ;;  %v3991_v45 = vpop.f32.mrb[27].mxu0 }
 0x5db   :  { %v1816_v46 = vpop.f32.mrb[27].mxu1  ;;  %v1773_v47 = vadd.f32 %v3989_v40, %v3688_v33  ;;  %v3992_v48 = vadd.f32 %v3991_v45, %v3990_v42  ;;  %v1968_v42 = vrot.slane %v1966_v32, 7 }
 0x5dc   :  { %v1817_v49 = vadd.f32 %v1816_v46, %v1768_v44  ;;  %v1828_v51 = vmax.f32 %v1814_v41, 0.0 }
 0x5dd   :  { %v1822_v50 = vadd.f32 %v4293_v35, %v1773_v47  ;;  %v1776_v52 = vadd.f32 %v3992_v48, %v3688_v33  ;;  %v1997_v33 = vshll.u32 %v1991_v26, 16  ;;  %v2010_v35 = vshll.u32 %v1993_v29, 16  ;;  %v1963_v47 = vld [vmem:[#allocation2 + $0x18] sm:$0x80] }
 0x5de   :  { %v1829_v53 = vmax.f32 %v1817_v49, 0.0 }
 0x5df   :  { %v1825_v54 = vadd.f32 %v4294_v43, %v1776_v52  ;;  %v1830_v56 = vmax.f32 %v1822_v50, 0.0  ;;  %v1999_v44 = vrot.slane %v1997_v33, 1  ;;  %v2012_v46 = vrot.slane %v2010_v35, 1  ;;  %v4572_v50 = vld [vmem:[#allocation8 + $0x3c0] sm:$0xff]  }
 0x5e0   :  { %v1832_v55 = vpack.c.bf16 %v1829_v53, %v1828_v51 }
 0x5e1   :  { %v1831_v57 = vmax.f32 %v1825_v54, 0.0  ;;  %v1979_v54 = vshrl.u32 %v1963_v47, 16 }
 0x5e2   :  { %4311 = vmatprep.mubr.bf16.mxu0 %v1832_v55 }
 0x5e3   :  { %v1833_v58 = vpack.c.bf16 %v1831_v57, %v1830_v56  ;;  %v1981_v56 = vrot.slane %v1979_v54, 7 }
 0x5e5   :  { %4312 = vmatmul.mubr.bf16.vlgmr.msra.gmra.mrb[28].mxu0 %v1833_v58 }
 0x5e6   :  { %4316 = vmatpush3.bf16.msra.mxu0 %v4549_v24 }
 0x5e7   :  { %4317 = vmatprep.subr.bf16.mxu0 %v4552_v59 }
 0x5ea   :  { %4318 = vmatpush3.bf16.msra.mxu0 %v4552_v59  ;;  %v4573_v59 = vld [vmem:[#allocation8 + $0x408] sm:$0xff]  }
 0x5eb   :  { %4319 = vmatprep.subr.bf16.mxu0 %v4555_v62 }
 0x5ee   :  { %4320 = vmatpush3.bf16.msra.mxu0 %v4555_v62  ;;  %v4576_v62 = vld [vmem:[#allocation8 + $0x440] sm:$0xff]  }
 0x5ef   :  { %4321 = vmatprep.subr.bf16.mxu0 %v4558_v1 }
 0x5f2   :  { %4322 = vmatpush3.bf16.msra.mxu0 %v4558_v1  ;;  %v4579_v1 = vld [vmem:[#allocation8 + $0x448] sm:$0xff]  }
 0x5f3   :  { %4323 = vmatprep.subr.bf16.mxu0 %v4561_v4 }
 0x5f6   :  { %4324 = vmatpush3.bf16.msra.mxu0 %v4561_v4  ;;  %v4582_v4 = vld [vmem:[#allocation8 + $0x450] sm:$0xff]  }
 0x5f7   :  { %4325 = vmatprep.subr.bf16.mxu0 %v4564_v7 }
 0x5fa   :  { %4326 = vmatpush3.bf16.msra.mxu0 %v4564_v7  ;;  %v4585_v7 = vld [vmem:[#allocation8 + $0x458] sm:$0xff]  }
 0x5fb   :  { %4327 = vmatprep.subr.bf16.mxu0 %v4567_v10 }
 0x5fe   :  { %4328 = vmatpush3.bf16.msra.mxu0 %v4567_v10  ;;  %v4588_v10 = vld [vmem:[#allocation8 + $0x460] sm:$0xff]  }
 0x5ff   :  { %4329 = vmatprep.subr.bf16.mxu0 %v4570_v13 }
 0x602   :  { %4330 = vmatpush3.bf16.msra.mxu0 %v4570_v13  ;;  %v4591_v13 = vld [vmem:[#allocation8 + $0x468] sm:$0xff]  }
 0x603   :  { %4335 = vmatprep.subr.bf16.mxu0 %v4576_v62 }
 0x6b8   :  { %v4313_v16 = vpop.f32.mrb[28].mxu0 }
 0x6b9   :  { %v1947_v17 = vadd.f32 %v4313_v16, %v3713_v15  ;;  %v1938_v60 = vpop.f32.mrb[29].mxu0  ;;  %v4594_v16 = vld [vmem:[#allocation8 + $0x478] sm:$0xff]  }
 0x6ba   :  { %v1939_v18 = vadd.f32 %v3713_v15, %v1938_v60  ;;  %v4314_v19 = vpop.f32.mrb[30].mxu0 }
 0x6bb   :  { %v1950_v20 = vadd.f32 %v4314_v19, %v3713_v15  ;;  %v1941_v21 = vpop.f32.mrb[31].mxu0  ;;  %v1955_v23 = vmax.f32 %v1947_v17, 0.0  ;;  %v4906_v17 = vld [vmem:[#allocation6 + $0xc0] sm:$0xff]  }
 0x6bc   :  { %v1942_v22 = vadd.f32 %v3713_v15, %v1941_v21  ;;  %v1953_v27 = vmax.f32 %v1939_v18, 0.0  ;;  %v4593_v15 = vld [vmem:[#allocation8 + $0x470] sm:$0xff]  }
 0x6bd   :  { %v1956_v24 = vmax.f32 %v1950_v20, 0.0  ;;  %v3722_v20 = vld [vmem:[#allocation9 + $0x7] ss:$0 sm:$0xff] }
 0x6be   :  { %v1954_v28 = vmax.f32 %v1942_v22, 0.0 }
 0x6bf   :  { %v1958_v30 = vpack.c.bf16 %v1956_v24, %v1955_v23 }
 0x6c0   :  { %v1957_v31 = vpack.c.bf16 %v1954_v28, %v1953_v27 }
 0x6c1   :  { %v1986_v34 = vshll.u32 %v1958_v30, 16  ;;  %v1983_v39 = vshrl.u32 %v1958_v30, 16 }
 0x6c2   :  { %v1970_v36 = vshrl.u32 %v1957_v31, 16  ;;  %v1973_v37 = vshll.u32 %v1957_v31, 16  ;;  %2245 = vmatprep.mubr.bf16.mxu1 %v1957_v31 }
 0x6c3   :  { %v2007_v40 = vrot.slane %v1986_v34, 1  ;;  %v1985_v53 = vrot.slane %v1983_v39, 7 }
 0x6c4   :  { %v1972_v41 = vrot.slane %v1970_v36, 7  ;;  %v1994_v43 = vrot.slane %v1973_v37, 1 }
 0x6c5   :  { %v2008_v45 = vor.u32 %v2007_v40, %v1983_v39  ;;  %v1988_v57 = vor.u32 %v1986_v34, %v1985_v53  ;;  %v2319_v34 = vld [vmem:[#allocation2] sm:$0xc0]  ;;  %v2362_v40 = vld [vmem:[#allocation2 + $0x10] sm:$0x3] }
 0x6c6   :  { %v1975_v48 = vor.u32 %v1973_v37, %v1972_v41  ;;  %v1995_v49 = vor.u32 %v1994_v43, %v1970_v36  ;;  %v2374_v47 = vshrl.u32 %v2362_v40, 16 }
 0x6c7   :  { %v2013_v55 = vsel %vm254_vm1, %v2008_v45, %v2012_v46  ;;  %v1989_v58 = vsel %vm224_vm0, %v1981_v56, %v1988_v57  ;;  %v2324_v45 = vshrl.u32 %v2319_v34, 16  ;;  %v2327_v46 = vshll.u32 %v2319_v34, 16 }
 0x6c8   :  { %v1976_v51 = vsel %vm224_vm0, %v1968_v42, %v1975_v48  ;;  %v2000_v52 = vsel %vm254_vm1, %v1995_v49, %v1999_v44  ;;  %v2377_v48 = vshll.u32 %v2362_v40, 16  ;;  %v2376_v54 = vrot.slane %v2374_v47, 1  ;;  %v4599_v40 = vld [vmem:[#allocation6 + $0xe0] sm:$0xff]   ;;  %v4606_v47 = vld [vmem:[#allocation8 + $0x4c8] sm:$0xff]  }
 0x6c9   :  { %2246 = vmatmul.mubr.bf16.vlgmr.msra.gmra.mrb[28].mxu1 %v1976_v51  ;;  %4331 = vmatprep.mubr.bf16.mxu0 %v2000_v52  ;;  %v2326_v52 = vrot.slane %v2324_v45, 6  ;;  %v2329_v53 = vrot.slane %v2327_v46, 7  ;;  %v4604_v45 = vld [vmem:[#allocation8 + $0x480] sm:$0xff]  }
 0x6ca   :  { %2253 = vmatprep.mubr.bf16.mxu1 %v1958_v30  ;;  %4332 = vmatmul.mubr.bf16.vlgmr.msra.gmra.mrb[32].mxu0 %v2013_v55  ;;  %v2379_v55 = vrot.slane %v2377_v48, 2  ;;  %v4605_v46 = vld [vmem:[#allocation8 + $0x500] sm:$0xff]   ;;  %v4607_v48 = vld [vmem:[#allocation8 + $0x488] sm:$0xff]  }
 0x6cb   :  { %4052 = vmatpush3.bf16.msra.mxu1 %v4572_v50  ;;  %4336 = vmatpush3.bf16.msra.mxu0 %v4576_v62  ;;  %v2330_v62 = vor.u32 %v2329_v53, %v2326_v52 }
 0x6cc   :  { %4053 = vmatprep.subr.bf16.mxu1 %v4573_v59  ;;  %4337 = vmatprep.subr.bf16.mxu0 %v4579_v1  ;;  %v2321_v59 = vld [vmem:[#allocation2 + $0x18] sm:$0xc0] }
 0x6cf   :  { %4054 = vmatpush3.bf16.msra.mxu1 %v4574_v38  ;;  %4338 = vmatpush3.bf16.msra.mxu0 %v4579_v1  ;;  %v2364_v38 = vld [vmem:[#allocation2 + $0x28] sm:$0x3] }
 0x6d0   :  { %4055 = vmatprep.subr.bf16.mxu1 %v4575_v61  ;;  %4339 = vmatprep.subr.bf16.mxu0 %v4582_v4 }
 0x6d1   :  { %2254 = vmatmul.mubr.bf16.gmra.mrb[32].mxu1 %v1989_v58 }
 0x6d3   :  { %4056 = vmatpush3.bf16.msra.mxu1 %v4577_v63  ;;  %4340 = vmatpush3.bf16.msra.mxu0 %v4582_v4 }
 0x6d4   :  { %4057 = vmatprep.subr.bf16.mxu1 %v4578_v0  ;;  %4341 = vmatprep.subr.bf16.mxu0 %v4585_v7  ;;  %v2380_v0 = vor.u32 %v2379_v55, %v2376_v54  ;;  %v3747_v55 = vld [vmem:[#allocation9 + $0x8] ss:$0 sm:$0xff] }
 0x6d7   :  { %4058 = vmatpush3.bf16.msra.mxu1 %v4580_v2  ;;  %4342 = vmatpush3.bf16.msra.mxu0 %v4585_v7  ;;  %v2392_v7 = vshrl.u32 %v2364_v38, 16 }
 0x6d8   :  { %4059 = vmatprep.subr.bf16.mxu1 %v4581_v3  ;;  %4343 = vmatprep.subr.bf16.mxu0 %v4588_v10 }
 0x6db   :  { %4060 = vmatpush3.bf16.msra.mxu1 %v4583_v5  ;;  %4344 = vmatpush3.bf16.msra.mxu0 %v4588_v10  ;;  %v2342_v5 = vshrl.u32 %v2321_v59, 16 }
 0x6dc   :  { %4061 = vmatprep.subr.bf16.mxu1 %v4584_v6  ;;  %4345 = vmatprep.subr.bf16.mxu0 %v4591_v13  ;;  %v2345_v6 = vshll.u32 %v2321_v59, 16 }
 0x6df   :  { %4062 = vmatpush3.bf16.msra.mxu1 %v4586_v8  ;;  %4346 = vmatpush3.bf16.msra.mxu0 %v4591_v13  ;;  %v2395_v8 = vshll.u32 %v2364_v38, 16 }
 0x6e0   :  { %4063 = vmatprep.subr.bf16.mxu1 %v4587_v9  ;;  %4347 = vmatprep.subr.bf16.mxu0 %v4593_v15 }
 0x6e3   :  { %4064 = vmatpush3.bf16.msra.mxu1 %v4589_v11  ;;  %4348 = vmatpush3.bf16.msra.mxu0 %v4593_v15  ;;  %v2344_v15 = vrot.slane %v2342_v5, 6 }
 0x6e4   :  { %4065 = vmatprep.subr.bf16.mxu1 %v4590_v12  ;;  %4349 = vmatprep.subr.bf16.mxu0 %v4594_v16 }
 0x6e7   :  { %4066 = vmatpush3.bf16.msra.mxu1 %v4592_v14  ;;  %4350 = vmatpush3.bf16.msra.mxu0 %v4594_v16  ;;  %v2347_v16 = vrot.slane %v2345_v6, 7 }
 0x6e8   :  { %4355 = vmatprep.subr.bf16.mxu1 %v4906_v17 }
 0x79c   :  { %v4029_v60 = vpop.f32.mrb[28].mxu1 }
 0x79d   :  { %v4030_v18 = vpop.f32.mrb[29].mxu1  ;;  %v4333_v19 = vpop.f32.mrb[32].mxu0 }
 0x79e   :  { %v4031_v21 = vadd.f32 %v4030_v18, %v4029_v60  ;;  %v4032_v22 = vpop.f32.mrb[30].mxu1  ;;  %v2296_v23 = vpop.f32.mrb[33].mxu0  ;;  %v2394_v60 = vrot.slane %v2392_v7, 1  ;;  %v2397_v18 = vrot.slane %v2395_v8, 2 }
 0x79f   :  { %v4033_v24 = vpop.f32.mrb[31].mxu1  ;;  %v4334_v25 = vpop.f32.mrb[34].mxu0 }
 0x7a0   :  { %v2248_v26 = vadd.f32 %v4031_v21, %v3722_v20  ;;  %v4034_v27 = vadd.f32 %v4033_v24, %v4032_v22  ;;  %v2299_v28 = vpop.f32.mrb[35].mxu0 }
 0x7a2   :  { %v2297_v29 = vadd.f32 %v2296_v23, %v2248_v26  ;;  %v2251_v30 = vadd.f32 %v4034_v27, %v3722_v20 }
 0x7a4   :  { %v2300_v31 = vadd.f32 %v2299_v28, %v2251_v30  ;;  %v4035_v32 = vpop.f32.mrb[32].mxu1  ;;  %v2311_v35 = vmax.f32 %v2297_v29, 0.0  ;;  %v2348_v28 = vor.u32 %v2347_v16, %v2344_v15  ;;  %v2398_v29 = vor.u32 %v2397_v18, %v2394_v60  ;;  %v4597_v30 = vld [vmem:[#allocation6 + $0xd0] sm:$0xff]   ;;  %v4608_v16 = vld [vmem:[#allocation8 + $0x508] sm:$0xff]  }
 0x7a5   :  { %v4036_v33 = vpop.f32.mrb[33].mxu1  ;;  %v4609_v60 = vld [vmem:[#allocation8 + $0x4d0] sm:$0xff]  }
 0x7a6   :  { %v2312_v36 = vmax.f32 %v2300_v31, 0.0  ;;  %v4037_v37 = vadd.f32 %v4036_v33, %v4035_v32  ;;  %v4038_v39 = vpop.f32.mrb[34].mxu1  ;;  %v4610_v18 = vld [vmem:[#allocation8 + $0x490] sm:$0xff]  }
 0x7a7   :  { %v4039_v41 = vpop.f32.mrb[35].mxu1 }
 0x7a8   :  { %v2315_v42 = vpack.c.bf16 %v2312_v36, %v2311_v35  ;;  %v2256_v43 = vadd.f32 %v4037_v37, %v3722_v20  ;;  %v4040_v44 = vadd.f32 %v4039_v41, %v4038_v39  ;;  %v4600_v41 = vld [vmem:[#allocation6 + $0xe8] sm:$0xff]  }
 0x7aa   :  { %2317 = vst [vmem:[#allocation2 + $0x8] sm:$0xff] %v2315_v42  ;;  %v2305_v49 = vadd.f32 %v4333_v19, %v2256_v43  ;;  %v2259_v50 = vadd.f32 %v4040_v44, %v3722_v20  ;;  %2631 = vmatprep.mubr.bf16.mxu1 %v2315_v42  ;;  %v4596_v19 = vld [vmem:[#allocation6 + $0xc8] sm:$0xff]   ;;  %v4601_v42 = vld [vmem:[#allocation6 + $0xf0] sm:$0xff]   ;;  %v4602_v43 = vld [vmem:[#allocation6 + $0xf8] sm:$0xff]  }
 0x7ab   :  { %v4603_v44 = vld [vmem:[#allocation8 + $0x4c0] sm:$0xff]  }
 0x7ac   :  { %v2308_v51 = vadd.f32 %v4334_v25, %v2259_v50  ;;  %v2313_v56 = vmax.f32 %v2305_v49, 0.0  ;;  %4099 = vmatprep.subr.bf16.mxu0 %v4603_v44 }
 0x7ae   :  { %v2314_v57 = vmax.f32 %v2308_v51, 0.0 }
 0x7b0   :  { %v2316_v58 = vpack.c.bf16 %v2314_v57, %v2313_v56 }
 0x7b1   :  { %v2320_v61 = vld [vmem:[#allocation2 + $0x8] sm:$0x7f] }
 0x7b2   :  { %v2361_v63 = vld [vmem:[#allocation2 + $0x8] sm:$0xfe]  ;;  %2318 = vst [vmem:[#allocation2 + $0x20] sm:$0xff] %v2316_v58  ;;  %v2332_v1 = vshrl.u32 %v2320_v61, 16  ;;  %v2335_v2 = vshll.u32 %v2320_v61, 16 }
 0x7b3   :  { %v2366_v3 = vshrl.u32 %v2361_v63, 16  ;;  %v2369_v4 = vshll.u32 %v2361_v63, 16 }
 0x7b4   :  { %v2334_v9 = vrot.slane %v2332_v1, 6  ;;  %v2337_v10 = vrot.slane %v2335_v2, 7 }
 0x7b5   :  { %v2368_v11 = vrot.slane %v2366_v3, 1  ;;  %v2371_v12 = vrot.slane %v2369_v4, 2 }
 0x7b6   :  { %v2338_v13 = vor.u32 %v2337_v10, %v2334_v9 }
 0x7b7   :  { %v2372_v14 = vor.u32 %v2371_v12, %v2368_v11 }
 0x7b8   :  { %v2339_v20 = vsel %vm583_vm2, %v2330_v62, %v2338_v13 }
 0x7b9   :  { %v2381_v21 = vsel %vm626_vm3, %v2372_v14, %v2380_v0  ;;  %2632 = vmatmul.mubr.bf16.vlgmr.msra.gmra.mrb[36].mxu1 %v2339_v20  ;;  %v2322_v22 = vld [vmem:[#allocation2 + $0x20] sm:$0x7f]  ;;  %v4612_v20 = vld [vmem:[#allocation8 + $0x4d8] sm:$0xff]  }
 0x7ba   :  { %4351 = vmatprep.mubr.bf16.mxu0 %v2381_v21  ;;  %v2363_v23 = vld [vmem:[#allocation2 + $0x20] sm:$0xfe]  ;;  %2639 = vmatprep.mubr.bf16.mxu1 %v2316_v58  ;;  %v2350_v24 = vshrl.u32 %v2322_v22, 16  ;;  %v2353_v25 = vshll.u32 %v2322_v22, 16  ;;  %v4613_v21 = vld [vmem:[#allocation8 + $0x498] sm:$0xff]  }
 0x7bb   :  { %v2384_v26 = vshrl.u32 %v2363_v23, 16  ;;  %v2387_v27 = vshll.u32 %v2363_v23, 16  ;;  %4356 = vmatpush3.bf16.msra.mxu1 %v4906_v17  ;;  %v4598_v17 = vld [vmem:[#allocation6 + $0xd8] sm:$0xff]   ;;  %v4615_v23 = vld [vmem:[#allocation8 + $0x4e0] sm:$0xff]  }
 0x7bc   :  { %4357 = vmatprep.subr.bf16.mxu1 %v4596_v19  ;;  %v2352_v31 = vrot.slane %v2350_v24, 6  ;;  %v2355_v32 = vrot.slane %v2353_v25, 7  ;;  %v4614_v22 = vld [vmem:[#allocation8 + $0x518] sm:$0xff]   ;;  %v4616_v24 = vld [vmem:[#allocation8 + $0x4a0] sm:$0xff]  }
 0x7bd   :  { %v2386_v33 = vrot.slane %v2384_v26, 1  ;;  %v2389_v34 = vrot.slane %v2387_v27, 2  ;;  %v4617_v25 = vld [vmem:[#allocation8 + $0x520] sm:$0xff]   ;;  %v4618_v26 = vld [vmem:[#allocation8 + $0x4e8] sm:$0xff]  }
 0x7be   :  { %v2356_v35 = vor.u32 %v2355_v32, %v2352_v31  ;;  %v4619_v27 = vld [vmem:[#allocation8 + $0x4a8] sm:$0xff]   ;;  %v4623_v31 = vld [vmem:[#allocation8 + $0x530] sm:$0xff]   ;;  %v4624_v32 = vld [vmem:[#allocation8 + $0x4f8] sm:$0xff]  }
 0x7bf   :  { %v2390_v36 = vor.u32 %v2389_v34, %v2386_v33  ;;  %4358 = vmatpush3.bf16.msra.mxu1 %v4596_v19  ;;  %v4611_v19 = vld [vmem:[#allocation8 + $0x510] sm:$0xff]   ;;  %v4625_v33 = vld [vmem:[#allocation8 + $0x4b8] sm:$0xff]  }
 0x7c0   :  { %4359 = vmatprep.subr.bf16.mxu1 %v4597_v30  ;;  %v2357_v37 = vsel %vm583_vm2, %v2348_v28, %v2356_v35  ;;  %v4620_v28 = vld [vmem:[#allocation8 + $0x528] sm:$0xff]   ;;  %v4626_v34 = vld [vmem:[#allocation8 + $0x538] sm:$0xff]   ;;  %v4627_v35 = vld [vmem:[#allocation8 + $0x580] sm:$0xff]  }
 0x7c1   :  { %v2399_v39 = vsel %vm626_vm3, %v2390_v36, %v2398_v29  ;;  %2640 = vmatmul.mubr.bf16.gmra.mrb[40].mxu1 %v2357_v37  ;;  %v4621_v29 = vld [vmem:[#allocation8 + $0x4f0] sm:$0xff]   ;;  %v3772_v36 = vld [vmem:[#allocation9 + $0x9] ss:$0 sm:$0xff] }
 0x7c2   :  { %4352 = vmatmul.mubr.bf16.vlgmr.msra.gmra.mrb[36].mxu0 %v2399_v39 }
 0x7c3   :  { %4360 = vmatpush3.bf16.msra.mxu1 %v4597_v30  ;;  %4100 = vmatpush3.bf16.msra.mxu0 %v4604_v45  ;;  %v4622_v30 = vld [vmem:[#allocation8 + $0x4b0] sm:$0xff]  }
 0x7c4   :  { %4361 = vmatprep.subr.bf16.mxu1 %v4598_v17  ;;  %4101 = vmatprep.subr.bf16.mxu0 %v4606_v47  ;;  %v2830_v47 = vld [vmem:[#allocation2] sm:$0x80] }
 0x7c7   :  { %4362 = vmatpush3.bf16.msra.mxu1 %v4598_v17  ;;  %4102 = vmatpush3.bf16.msra.mxu0 %v4607_v48  ;;  %v2860_v48 = vld [vmem:[#allocation2 + $0x10] sm:$0x1] }
 0x7c8   :  { %4363 = vmatprep.subr.bf16.mxu1 %v4599_v40  ;;  %4103 = vmatprep.subr.bf16.mxu0 %v4609_v60  ;;  %v4630_v60 = vld [vmem:[#allocation8 + $0x548] sm:$0xff]  }
 0x7cb   :  { %4364 = vmatpush3.bf16.msra.mxu1 %v4599_v40  ;;  %4104 = vmatpush3.bf16.msra.mxu0 %v4610_v18  ;;  %v4631_v18 = vld [vmem:[#allocation8 + $0x590] sm:$0xff]  }
 0x7cc   :  { %4365 = vmatprep.subr.bf16.mxu1 %v4600_v41  ;;  %4105 = vmatprep.subr.bf16.mxu0 %v4612_v20  ;;  %v4633_v20 = vld [vmem:[#allocation8 + $0x550] sm:$0xff]  }
 0x7cf   :  { %4366 = vmatpush3.bf16.msra.mxu1 %v4600_v41  ;;  %4106 = vmatpush3.bf16.msra.mxu0 %v4613_v21  ;;  %v4634_v21 = vld [vmem:[#allocation8 + $0x598] sm:$0xff]  }
 0x7d0   :  { %4367 = vmatprep.subr.bf16.mxu1 %v4601_v42  ;;  %4107 = vmatprep.subr.bf16.mxu0 %v4615_v23  ;;  %v4636_v23 = vld [vmem:[#allocation8 + $0x558] sm:$0xff]  }
 0x7d3   :  { %4368 = vmatpush3.bf16.msra.mxu1 %v4601_v42  ;;  %4108 = vmatpush3.bf16.msra.mxu0 %v4616_v24  ;;  %v4637_v24 = vld [vmem:[#allocation8 + $0x5a0] sm:$0xff]  }
 0x7d4   :  { %4369 = vmatprep.subr.bf16.mxu1 %v4602_v43  ;;  %4109 = vmatprep.subr.bf16.mxu0 %v4618_v26  ;;  %v4639_v26 = vld [vmem:[#allocation8 + $0x560] sm:$0xff]  }
 0x7d7   :  { %4370 = vmatpush3.bf16.msra.mxu1 %v4602_v43  ;;  %4110 = vmatpush3.bf16.msra.mxu0 %v4619_v27  ;;  %v4640_v27 = vld [vmem:[#allocation8 + $0x5a8] sm:$0xff]  }
 0x7d8   :  { %4375 = vmatprep.subr.bf16.mxu1 %v4605_v46  ;;  %4111 = vmatprep.subr.bf16.mxu0 %v4621_v29  ;;  %v4642_v29 = vld [vmem:[#allocation8 + $0x568] sm:$0xff]  }
 0x7db   :  { %4112 = vmatpush3.bf16.msra.mxu0 %v4622_v30  ;;  %v4643_v30 = vld [vmem:[#allocation8 + $0x5b0] sm:$0xff]  }
 0x7dc   :  { %4113 = vmatprep.subr.bf16.mxu0 %v4624_v32  ;;  %v4645_v32 = vld [vmem:[#allocation8 + $0x570] sm:$0xff]  }
 0x7df   :  { %4114 = vmatpush3.bf16.msra.mxu0 %v4625_v33  ;;  %v4646_v33 = vld [vmem:[#allocation8 + $0x5b8] sm:$0xff]  }
 0x7e0   :  { %4137 = vmatprep.subr.bf16.mxu0 %v4627_v35  ;;  %v4648_v35 = vld [vmem:[#allocation8 + $0x578] sm:$0xff]  }
 0x88c   :  { %v4067_v49 = vpop.f32.mrb[36].mxu1 }
 0x88d   :  { %v4068_v50 = vpop.f32.mrb[37].mxu1 }
 0x88e   :  { %v4069_v51 = vadd.f32 %v4068_v50, %v4067_v49  ;;  %v4070_v52 = vpop.f32.mrb[38].mxu1 }
 0x88f   :  { %v4071_v53 = vpop.f32.mrb[39].mxu1 }
 0x890   :  { %v4072_v54 = vadd.f32 %v4071_v53, %v4070_v52  ;;  %v2634_v58 = vadd.f32 %v4069_v51, %v3747_v55  ;;  %v2862_v51 = vld [vmem:[#allocation2 + $0x28] sm:$0x1] }
 0x892   :  { %v2637_v1 = vadd.f32 %v4072_v54, %v3747_v55  ;;  %v2835_v54 = vshrl.u32 %v2830_v47, 16 }
 0x894   :  { %v4073_v56 = vpop.f32.mrb[40].mxu1 }
 0x895   :  { %v4353_v57 = vpop.f32.mrb[36].mxu0  ;;  %v4074_v59 = vpop.f32.mrb[41].mxu1 }
 0x896   :  { %v2682_v38 = vpop.f32.mrb[37].mxu0  ;;  %v4075_v61 = vadd.f32 %v4074_v59, %v4073_v56  ;;  %v4076_v63 = vpop.f32.mrb[42].mxu1 }
 0x897   :  { %v2683_v62 = vadd.f32 %v2682_v38, %v2634_v58  ;;  %v4354_v0 = vpop.f32.mrb[38].mxu0  ;;  %v4077_v2 = vpop.f32.mrb[43].mxu1 }
 0x898   :  { %v2685_v3 = vpop.f32.mrb[39].mxu0  ;;  %v2642_v4 = vadd.f32 %v4075_v61, %v3747_v55  ;;  %v4078_v5 = vadd.f32 %v4077_v2, %v4076_v63  ;;  %v2837_v63 = vrot.slane %v2835_v54, 7 }
 0x899   :  { %v2686_v6 = vadd.f32 %v2685_v3, %v2637_v1  ;;  %v2697_v8 = vmax.f32 %v2683_v62, 0.0 }
 0x89a   :  { %v2691_v7 = vadd.f32 %v4353_v57, %v2642_v4  ;;  %v2645_v9 = vadd.f32 %v4078_v5, %v3747_v55  ;;  %v2866_v55 = vshll.u32 %v2860_v48, 16  ;;  %v2879_v57 = vshll.u32 %v2862_v51, 16  ;;  %v2832_v4 = vld [vmem:[#allocation2 + $0x18] sm:$0x80] }
 0x89b   :  { %v2698_v10 = vmax.f32 %v2686_v6, 0.0 }
 0x89c   :  { %v2694_v11 = vadd.f32 %v4354_v0, %v2645_v9  ;;  %v2699_v13 = vmax.f32 %v2691_v7, 0.0  ;;  %v2868_v1 = vrot.slane %v2866_v55, 1  ;;  %v2881_v3 = vrot.slane %v2879_v57, 1  ;;  %v4628_v7 = vld [vmem:[#allocation8 + $0x540] sm:$0xff]  }
 0x89d   :  { %v2701_v12 = vpack.c.bf16 %v2698_v10, %v2697_v8  ;;  %v3188_v55 = vld [vmem:[#allocation2] sm:$0xc0] }
 0x89e   :  { %v2700_v14 = vmax.f32 %v2694_v11, 0.0  ;;  %v2848_v11 = vshrl.u32 %v2832_v4, 16 }
 0x89f   :  { %4371 = vmatprep.mubr.bf16.mxu1 %v2701_v12 }
 0x8a0   :  { %v2702_v15 = vpack.c.bf16 %v2700_v14, %v2699_v13  ;;  %v2850_v13 = vrot.slane %v2848_v11, 7 }
 0x8a2   :  { %4372 = vmatmul.mubr.bf16.vlgmr.msra.gmra.mrb[44].mxu1 %v2702_v15 }
 0x8a3   :  { %4376 = vmatpush3.bf16.msra.mxu1 %v4605_v46 }
 0x8a4   :  { %4377 = vmatprep.subr.bf16.mxu1 %v4608_v16 }
 0x8a7   :  { %4378 = vmatpush3.bf16.msra.mxu1 %v4608_v16  ;;  %v4629_v16 = vld [vmem:[#allocation8 + $0x588] sm:$0xff]  }
 0x8a8   :  { %4379 = vmatprep.subr.bf16.mxu1 %v4611_v19 }
 0x8ab   :  { %4380 = vmatpush3.bf16.msra.mxu1 %v4611_v19  ;;  %v4632_v19 = vld [vmem:[#allocation8 + $0x5c0] sm:$0xff]  }
 0x8ac   :  { %4381 = vmatprep.subr.bf16.mxu1 %v4614_v22 }
 0x8af   :  { %4382 = vmatpush3.bf16.msra.mxu1 %v4614_v22  ;;  %v4635_v22 = vld [vmem:[#allocation8 + $0x5c8] sm:$0xff]  }
 0x8b0   :  { %4383 = vmatprep.subr.bf16.mxu1 %v4617_v25 }
 0x8b3   :  { %4384 = vmatpush3.bf16.msra.mxu1 %v4617_v25  ;;  %v4638_v25 = vld [vmem:[#allocation8 + $0x5d0] sm:$0xff]  }
 0x8b4   :  { %4385 = vmatprep.subr.bf16.mxu1 %v4620_v28 }
 0x8b7   :  { %4386 = vmatpush3.bf16.msra.mxu1 %v4620_v28  ;;  %v4641_v28 = vld [vmem:[#allocation8 + $0x5d8] sm:$0xff]  }
 0x8b8   :  { %4387 = vmatprep.subr.bf16.mxu1 %v4623_v31 }
 0x8bb   :  { %4388 = vmatpush3.bf16.msra.mxu1 %v4623_v31  ;;  %v4644_v31 = vld [vmem:[#allocation8 + $0x5e0] sm:$0xff]  }
 0x8bc   :  { %4389 = vmatprep.subr.bf16.mxu1 %v4626_v34 }
 0x8bf   :  { %4390 = vmatpush3.bf16.msra.mxu1 %v4626_v34  ;;  %v4647_v34 = vld [vmem:[#allocation8 + $0x5e8] sm:$0xff]  }
 0x8c0   :  { %4395 = vmatprep.subr.bf16.mxu1 %v4632_v19 }
 0x975   :  { %v4373_v37 = vpop.f32.mrb[44].mxu1 }
 0x976   :  { %v2816_v39 = vadd.f32 %v4373_v37, %v3772_v36  ;;  %v2807_v17 = vpop.f32.mrb[45].mxu1  ;;  %v4650_v37 = vld [vmem:[#allocation8 + $0x5f8] sm:$0xff]  }
 0x977   :  { %v2808_v40 = vadd.f32 %v3772_v36, %v2807_v17  ;;  %v4374_v41 = vpop.f32.mrb[46].mxu1 }
 0x978   :  { %v2819_v42 = vadd.f32 %v4374_v41, %v3772_v36  ;;  %v2810_v43 = vpop.f32.mrb[47].mxu1  ;;  %v2824_v45 = vmax.f32 %v2816_v39, 0.0  ;;  %v3781_v41 = vld [vmem:[#allocation9 + $0xa] ss:$0 sm:$0xff] }
 0x979   :  { %v2811_v44 = vadd.f32 %v3772_v36, %v2810_v43  ;;  %v2822_v49 = vmax.f32 %v2808_v40, 0.0  ;;  %v4649_v36 = vld [vmem:[#allocation8 + $0x5f0] sm:$0xff]  }
 0x97a   :  { %v2825_v46 = vmax.f32 %v2819_v42, 0.0 }
 0x97b   :  { %v2823_v50 = vmax.f32 %v2811_v44, 0.0 }
 0x97c   :  { %v2827_v52 = vpack.c.bf16 %v2825_v46, %v2824_v45 }
 0x97d   :  { %v2826_v53 = vpack.c.bf16 %v2823_v50, %v2822_v49 }
 0x97e   :  { %v2855_v56 = vshll.u32 %v2827_v52, 16  ;;  %v2852_v38 = vshrl.u32 %v2827_v52, 16 }
 0x97f   :  { %v2839_v58 = vshrl.u32 %v2826_v53, 16  ;;  %v2842_v59 = vshll.u32 %v2826_v53, 16  ;;  %3114 = vmatprep.mubr.bf16.mxu0 %v2826_v53 }
 0x980   :  { %v2876_v61 = vrot.slane %v2855_v56, 1  ;;  %v2854_v10 = vrot.slane %v2852_v38, 7 }
 0x981   :  { %v2841_v62 = vrot.slane %v2839_v58, 7  ;;  %v2863_v0 = vrot.slane %v2842_v59, 1 }
 0x982   :  { %v2877_v2 = vor.u32 %v2876_v61, %v2852_v38  ;;  %v2857_v14 = vor.u32 %v2855_v56, %v2854_v10  ;;  %v3231_v38 = vld [vmem:[#allocation2 + $0x10] sm:$0x3] }
 0x983   :  { %v2844_v5 = vor.u32 %v2842_v59, %v2841_v62  ;;  %v2864_v6 = vor.u32 %v2863_v0, %v2839_v58  ;;  %v3246_v4 = vshll.u32 %v3231_v38, 16 }
 0x984   :  { %v2882_v12 = vsel %vm254_vm1, %v2877_v2, %v2881_v3  ;;  %v2858_v15 = vsel %vm224_vm0, %v2850_v13, %v2857_v14  ;;  %v3196_v2 = vshll.u32 %v3188_v55, 16  ;;  %v3243_v3 = vshrl.u32 %v3231_v38, 16 }
 0x985   :  { %v2845_v8 = vsel %vm224_vm0, %v2837_v63, %v2844_v5  ;;  %v2869_v9 = vsel %vm254_vm1, %v2864_v6, %v2868_v1  ;;  %v3193_v1 = vshrl.u32 %v3188_v55, 16  ;;  %v3248_v11 = vrot.slane %v3246_v4, 2 }
 0x986   :  { %3115 = vmatmul.mubr.bf16.vlgmr.msra.gmra.mrb[40].mxu0 %v2845_v8  ;;  %4391 = vmatprep.mubr.bf16.mxu1 %v2869_v9  ;;  %v3198_v9 = vrot.slane %v3196_v2, 7  ;;  %v3245_v10 = vrot.slane %v3243_v3, 1 }
 0x987   :  { %3122 = vmatprep.mubr.bf16.mxu0 %v2827_v52  ;;  %4392 = vmatmul.mubr.bf16.vlgmr.msra.gmra.mrb[48].mxu1 %v2882_v12  ;;  %v3195_v8 = vrot.slane %v3193_v1, 6 }
 0x988   :  { %4138 = vmatpush3.bf16.msra.mxu0 %v4628_v7  ;;  %4396 = vmatpush3.bf16.msra.mxu1 %v4632_v19 }
 0x989   :  { %4139 = vmatprep.subr.bf16.mxu0 %v4629_v16  ;;  %4397 = vmatprep.subr.bf16.mxu1 %v4635_v22  ;;  %v3233_v16 = vld [vmem:[#allocation2 + $0x28] sm:$0x3] }
 0x98c   :  { %4140 = vmatpush3.bf16.msra.mxu0 %v4630_v60  ;;  %4398 = vmatpush3.bf16.msra.mxu1 %v4635_v22 }
 0x98d   :  { %4141 = vmatprep.subr.bf16.mxu0 %v4631_v18  ;;  %4399 = vmatprep.subr.bf16.mxu1 %v4638_v25  ;;  %v3199_v18 = vor.u32 %v3198_v9, %v3195_v8 }
 0x98e   :  { %3123 = vmatmul.mubr.bf16.gmra.mrb[44].mxu0 %v2858_v15  ;;  %v3190_v15 = vld [vmem:[#allocation2 + $0x18] sm:$0xc0] }
 0x990   :  { %4142 = vmatpush3.bf16.msra.mxu0 %v4633_v20  ;;  %4400 = vmatpush3.bf16.msra.mxu1 %v4638_v25  ;;  %v3249_v20 = vor.u32 %v3248_v11, %v3245_v10  ;;  %v3211_v25 = vshrl.u32 %v3190_v15, 16 }
 0x991   :  { %4143 = vmatprep.subr.bf16.mxu0 %v4634_v21  ;;  %4401 = vmatprep.subr.bf16.mxu1 %v4641_v28 }
 0x994   :  { %4144 = vmatpush3.bf16.msra.mxu0 %v4636_v23  ;;  %4402 = vmatpush3.bf16.msra.mxu1 %v4641_v28  ;;  %v3264_v28 = vshll.u32 %v3233_v16, 16 }
 0x995   :  { %4145 = vmatprep.subr.bf16.mxu0 %v4637_v24  ;;  %4403 = vmatprep.subr.bf16.mxu1 %v4644_v31 }
 0x998   :  { %4146 = vmatpush3.bf16.msra.mxu0 %v4639_v26  ;;  %4404 = vmatpush3.bf16.msra.mxu1 %v4644_v31  ;;  %v3214_v26 = vshll.u32 %v3190_v15, 16 }
 0x999   :  { %4147 = vmatprep.subr.bf16.mxu0 %v4640_v27  ;;  %4405 = vmatprep.subr.bf16.mxu1 %v4647_v34  ;;  %v3261_v27 = vshrl.u32 %v3233_v16, 16 }
 0x99c   :  { %4148 = vmatpush3.bf16.msra.mxu0 %v4642_v29  ;;  %4406 = vmatpush3.bf16.msra.mxu1 %v4647_v34 }
 0x99d   :  { %4149 = vmatprep.subr.bf16.mxu0 %v4643_v30  ;;  %4407 = vmatprep.subr.bf16.mxu1 %v4649_v36 }
 0x9a0   :  { %4150 = vmatpush3.bf16.msra.mxu0 %v4645_v32  ;;  %4408 = vmatpush3.bf16.msra.mxu1 %v4649_v36  ;;  %v3216_v36 = vrot.slane %v3214_v26, 7 }
 0x9a1   :  { %4151 = vmatprep.subr.bf16.mxu0 %v4646_v33  ;;  %4409 = vmatprep.subr.bf16.mxu1 %v4650_v37 }
 0x9a4   :  { %4152 = vmatpush3.bf16.msra.mxu0 %v4648_v35  ;;  %4410 = vmatpush3.bf16.msra.mxu1 %v4650_v37  ;;  %v3213_v35 = vrot.slane %v3211_v25, 6  ;;  %v3263_v37 = vrot.slane %v3261_v27, 1 }
 0xa59   :  { %v4115_v39 = vpop.f32.mrb[40].mxu0 }
 0xa5a   :  { %v4116_v17 = vpop.f32.mrb[41].mxu0  ;;  %v4393_v40 = vpop.f32.mrb[48].mxu1 }
 0xa5b   :  { %v4117_v42 = vadd.f32 %v4116_v17, %v4115_v39  ;;  %v4118_v43 = vpop.f32.mrb[42].mxu0  ;;  %v3165_v44 = vpop.f32.mrb[49].mxu1  ;;  %v3266_v39 = vrot.slane %v3264_v28, 2 }
 0xa5c   :  { %v4119_v45 = vpop.f32.mrb[43].mxu0  ;;  %v4394_v46 = vpop.f32.mrb[50].mxu1 }
 0xa5d   :  { %v3117_v47 = vadd.f32 %v4117_v42, %v3781_v41  ;;  %v4120_v48 = vadd.f32 %v4119_v45, %v4118_v43  ;;  %v3168_v49 = vpop.f32.mrb[51].mxu1 }
 0xa5f   :  { %v3166_v50 = vadd.f32 %v3165_v44, %v3117_v47  ;;  %v3120_v51 = vadd.f32 %v4120_v48, %v3781_v41  ;;  %v3217_v47 = vor.u32 %v3216_v36, %v3213_v35  ;;  %v3267_v48 = vor.u32 %v3266_v39, %v3263_v37 }
 0xa61   :  { %v3169_v52 = vadd.f32 %v3168_v49, %v3120_v51  ;;  %v4121_v53 = vpop.f32.mrb[44].mxu0  ;;  %v3180_v56 = vmax.f32 %v3166_v50, 0.0 }
 0xa62   :  { %v4122_v54 = vpop.f32.mrb[45].mxu0 }
 0xa63   :  { %v3181_v57 = vmax.f32 %v3169_v52, 0.0  ;;  %v4123_v58 = vadd.f32 %v4122_v54, %v4121_v53  ;;  %v4124_v59 = vpop.f32.mrb[46].mxu0 }
 0xa64   :  { %v4125_v61 = vpop.f32.mrb[47].mxu0 }
 0xa65   :  { %v3184_v62 = vpack.c.bf16 %v3181_v57, %v3180_v56  ;;  %v3125_v63 = vadd.f32 %v4123_v58, %v3781_v41  ;;  %v4126_v0 = vadd.f32 %v4125_v61, %v4124_v59 }
 0xa67   :  { %3186 = vst [vmem:[#allocation2 + $0x8] sm:$0xff] %v3184_v62  ;;  %v3174_v5 = vadd.f32 %v4393_v40, %v3125_v63  ;;  %v3128_v6 = vadd.f32 %v4126_v0, %v3781_v41  ;;  %3500 = vmatprep.mubr.bf16.mxu0 %v3184_v62  ;;  %v3806_v63 = vld [vmem:[#allocation9 + $0xb] ss:$0 sm:$0xff] }
 0xa69   :  { %v3177_v7 = vadd.f32 %v4394_v46, %v3128_v6  ;;  %v3182_v12 = vmax.f32 %v3174_v5, 0.0 }
 0xa6b   :  { %v3183_v13 = vmax.f32 %v3177_v7, 0.0 }
 0xa6d   :  { %v3185_v14 = vpack.c.bf16 %v3183_v13, %v3182_v12 }
 0xa6e   :  { %v3189_v60 = vld [vmem:[#allocation2 + $0x8] sm:$0x7f] }
 0xa6f   :  { %v3230_v19 = vld [vmem:[#allocation2 + $0x8] sm:$0xfe]  ;;  %3187 = vst [vmem:[#allocation2 + $0x20] sm:$0xff] %v3185_v14  ;;  %v3201_v21 = vshrl.u32 %v3189_v60, 16  ;;  %v3204_v22 = vshll.u32 %v3189_v60, 16 }
 0xa70   :  { %v3235_v23 = vshrl.u32 %v3230_v19, 16  ;;  %v3238_v24 = vshll.u32 %v3230_v19, 16 }
 0xa71   :  { %v3203_v29 = vrot.slane %v3201_v21, 6  ;;  %v3206_v30 = vrot.slane %v3204_v22, 7 }
 0xa72   :  { %v3237_v31 = vrot.slane %v3235_v23, 1  ;;  %v3240_v32 = vrot.slane %v3238_v24, 2 }
 0xa73   :  { %v3207_v33 = vor.u32 %v3206_v30, %v3203_v29 }
 0xa74   :  { %v3241_v34 = vor.u32 %v3240_v32, %v3237_v31 }
 0xa75   :  { %v3208_v17 = vsel %vm583_vm2, %v3199_v18, %v3207_v33 }
 0xa76   :  { %v3250_v40 = vsel %vm626_vm3, %v3241_v34, %v3249_v20  ;;  %3501 = vmatmul.mubr.bf16.vlgmr.msra.gmra.mrb[48].mxu0 %v3208_v17  ;;  %v3191_v41 = vld [vmem:[#allocation2 + $0x20] sm:$0x7f] }
 0xa77   :  { %4411 = vmatprep.mubr.bf16.mxu1 %v3250_v40  ;;  %v3232_v42 = vld [vmem:[#allocation2 + $0x20] sm:$0xfe]  ;;  %3508 = vmatprep.mubr.bf16.mxu0 %v3185_v14  ;;  %v3219_v43 = vshrl.u32 %v3191_v41, 16  ;;  %v3222_v44 = vshll.u32 %v3191_v41, 16 }
 0xa78   :  { %v3253_v45 = vshrl.u32 %v3232_v42, 16  ;;  %v3256_v46 = vshll.u32 %v3232_v42, 16 }
 0xa79   :  { %v3221_v49 = vrot.slane %v3219_v43, 6  ;;  %v3224_v50 = vrot.slane %v3222_v44, 7 }
 0xa7a   :  { %v3255_v51 = vrot.slane %v3253_v45, 1  ;;  %v3258_v52 = vrot.slane %v3256_v46, 2 }
 0xa7b   :  { %v3225_v53 = vor.u32 %v3224_v50, %v3221_v49 }
 0xa7c   :  { %v3259_v54 = vor.u32 %v3258_v52, %v3255_v51 }
 0xa7d   :  { %v3226_v55 = vsel %vm583_vm2, %v3217_v47, %v3225_v53 }
 0xa7e   :  { %v3268_v56 = vsel %vm626_vm3, %v3259_v54, %v3267_v48  ;;  %3509 = vmatmul.mubr.bf16.gmra.mrb[52].mxu0 %v3226_v55 }
 0xa7f   :  { %4412 = vmatmul.mubr.bf16.vlgmr.msra.gmra.mrb[52].mxu1 %v3268_v56 }
 0xb49   :  { %v4153_v57 = vpop.f32.mrb[48].mxu0 }
 0xb4a   :  { %v4154_v58 = vpop.f32.mrb[49].mxu0 }
 0xb4b   :  { %v4155_v59 = vadd.f32 %v4154_v58, %v4153_v57  ;;  %v4156_v38 = vpop.f32.mrb[50].mxu0 }
 0xb4c   :  { %v4157_v61 = vpop.f32.mrb[51].mxu0 }
 0xb4d   :  { %v4158_v62 = vadd.f32 %v4157_v61, %v4156_v38  ;;  %v3503_v2 = vadd.f32 %v4155_v59, %v3806_v63 }
 0xb4f   :  { %v3506_v9 = vadd.f32 %v4158_v62, %v3806_v63 }
 0xb51   :  { %v4159_v0 = vpop.f32.mrb[52].mxu0 }
 0xb52   :  { %v4413_v1 = vpop.f32.mrb[52].mxu1  ;;  %v4160_v3 = vpop.f32.mrb[53].mxu0 }
 0xb53   :  { %v3551_v4 = vpop.f32.mrb[53].mxu1  ;;  %v4161_v5 = vadd.f32 %v4160_v3, %v4159_v0  ;;  %v4162_v7 = vpop.f32.mrb[54].mxu0 }
 0xb54   :  { %v3552_v6 = vadd.f32 %v3551_v4, %v3503_v2  ;;  %v4414_v8 = vpop.f32.mrb[54].mxu1  ;;  %v4163_v10 = vpop.f32.mrb[55].mxu0 }
 0xb55   :  { %v3554_v11 = vpop.f32.mrb[55].mxu1  ;;  %v3511_v12 = vadd.f32 %v4161_v5, %v3806_v63  ;;  %v4164_v14 = vadd.f32 %v4163_v10, %v4162_v7 }
 0xb56   :  { %v3566_v13 = vmax.f32 %v3552_v6, 0.0  ;;  %v3555_v15 = vadd.f32 %v3554_v11, %v3506_v9 }
 0xb57   :  { %v3560_v16 = vadd.f32 %v4413_v1, %v3511_v12  ;;  %v3514_v60 = vadd.f32 %v4164_v14, %v3806_v63 }
 0xb58   :  { %3570 = vst [vmem:[#allocation11] sm:$0xff] %v3566_v13  ;;  %v3567_v18 = vmax.f32 %v3555_v15, 0.0 }
 0xb59   :  { %v3568_v19 = vmax.f32 %v3560_v16, 0.0  ;;  %v3563_v20 = vadd.f32 %v4414_v8, %v3514_v60 }
 0xb5a   :  { %3571 = vst [vmem:[#allocation11 + $0x8] sm:$0xff] %v3567_v18 }
 0xb5b   :  { %3572 = vst [vmem:[#allocation11 + $0x10] sm:$0xff] %v3568_v19  ;;  %v3569_v21 = vmax.f32 %v3563_v20, 0.0 }
 0xb5d   :  { %3573 = vst [vmem:[#allocation11 + $0x18] sm:$0xff] %v3569_v21 }
 0xb5e   :  { %4750 = shalt.err (!%p4747_p8)
}
 0xb5f   :  { %s4751_s15 = scalar_lea.hbm %s4941_s4, 512 }
 0xb60   :  { %p4752_p9 = scmp.ne.s32.totalorder %s4941_s4, %s4751_s15  ;;  %p4755_p10 = scmp.lt.u32.totalorder %s4751_s15, %s4941_s4 }
 0xb62   :  { %p4757_p11 = pnand %p4755_p10, %p4752_p9 }
 0xb64   :  { %4760 = shalt.err (!%p4757_p11)
}
 0xb65   :  { %3585 = dma.vmem_to_hbm [thread:$0]  %s3580_s12, 512, %s4941_s4, [#allocation5], %s4775_s2, %s4775_s2, %s4776_s27  }
 0xb66   :  { %4767 = dma.done.wait [#allocation5], 512  }
 0xb67   :  { %4768 = vsyncadd [#allocation5], 4294966784 }
 0xb68   :  { %3589 = vsyncpa [#allocation4], 1 }
 0xb69   :  { %3590 = vsyncpa [#allocation7], 1 }
 0xb6a   :  { %3591 = vsyncpa [#allocation10], 1 }
 0xb6b   :  { %3592 = vsyncpa [#allocation5], 1 }

</bundles_post_ra>
